<compile_context>
chip_gen: v6e
topology: v6e:2x2x1
jax: 0.10.0
libtpu: 0.0.40
codegen_flags: <defaults>
</compile_context>

<pallas_src>
import functools
import math

import jax
import jax.numpy as jnp
from jax.experimental import pallas as pl
from jax.experimental.pallas import tpu as pltpu

PRELU_ALPHA = 0.25   # torch.nn.PReLU() default init (single shared parameter)


def _round_up(x, m):
    return ((x + m - 1) // m) * m


# ---------------------------------------------------------------------------
# Pallas kernels: GEMM with fused bias + optional PReLU epilogue
# ---------------------------------------------------------------------------
def _mm_kernel_1k(a_ref, b_ref, bias_ref, o_ref, *, act, alpha):
    out = jnp.dot(a_ref[...], b_ref[...], preferred_element_type=jnp.float32)
    out = out + bias_ref[...]
    if act == "prelu":
        out = jnp.where(out >= 0.0, out, alpha * out)
    o_ref[...] = out.astype(o_ref.dtype)


def _mm_kernel_acc(a_ref, b_ref, bias_ref, o_ref, acc_ref, *, act, alpha):
    k = pl.program_id(2)

    @pl.when(k == 0)
    def _():
        acc_ref[...] = jnp.zeros_like(acc_ref)

    acc_ref[...] += jnp.dot(a_ref[...], b_ref[...],
                            preferred_element_type=jnp.float32)

    @pl.when(k == pl.num_programs(2) - 1)
    def _():
        out = acc_ref[...] + bias_ref[...]
        if act == "prelu":
            out = jnp.where(out >= 0.0, out, alpha * out)
        o_ref[...] = out.astype(o_ref.dtype)


def _gemm_tiles(K, N):
    """K/N padding + tile sizes (depend only on K, N so weights/biases can be
    padded once at init)."""
    tk = min(512, _round_up(K, 128))
    Kp = _round_up(K, tk)
    tn = 128 if N <= 128 else 256
    Np = _round_up(N, tn)
    return tk, Kp, tn, Np


def matmul_bias_act(a, w_p, b_p, K, N, act=None, alpha=PRELU_ALPHA):
    """act(a @ w + bias).  a:(M,K);  w_p:(Kp,Np) bf16 pre-padded;
    b_p:(1,Np) f32 pre-padded.  Returns (M,N) f32."""
    M = a.shape[0]
    tk, Kp, tn, Np = _gemm_tiles(K, N)
    assert w_p.shape == (Kp, Np) and b_p.shape == (1, Np)

    if M <= 256:                       # use the true M (sublane-rounded), no 128 padding
        tm = Mp = _round_up(M, 16)
    else:
        tm = 256
        Mp = _round_up(M, tm)

    a_p = jnp.zeros((Mp, Kp), jnp.bfloat16).at[:M, :K].set(a.astype(jnp.bfloat16))

    grid = (Mp // tm, Np // tn, Kp // tk)
    nk = grid[2]

    in_specs = [
        pl.BlockSpec((tm, tk), lambda i, j, k: (i, k)),
        pl.BlockSpec((tk, tn), lambda i, j, k: (k, j)),
        pl.BlockSpec((1, tn), lambda i, j, k: (0, j)),
    ]
    out_spec = pl.BlockSpec((tm, tn), lambda i, j, k: (i, j))

    if nk == 1:   # whole K in one block: no scratch accumulator, no gates
        kernel = functools.partial(_mm_kernel_1k, act=act, alpha=float(alpha))
        scratch = []
    else:
        kernel = functools.partial(_mm_kernel_acc, act=act, alpha=float(alpha))
        scratch = [pltpu.VMEM((tm, tn), jnp.float32)]

    out = pl.pallas_call(
        kernel,
        out_shape=jax.ShapeDtypeStruct((Mp, Np), jnp.float32),
        grid_spec=pltpu.PrefetchScalarGridSpec(
            num_scalar_prefetch=0,
            grid=grid,
            in_specs=in_specs,
            out_specs=out_spec,
            scratch_shapes=scratch),
        compiler_params=pltpu.CompilerParams(
            dimension_semantics=("parallel", "parallel", "arbitrary"),
            vmem_limit_bytes=32 * 1024 * 1024),
    )(a_p, w_p, b_p)
    return out[:M, :N]


# ---------------------------------------------------------------------------
# Layer preparation: weights reshaped to GEMM layout and zero-padded ONCE
# ---------------------------------------------------------------------------
def prep_conv(weight, bias, stride, padding):
    """weight: (Cout, Cin, kh, kw), PyTorch Conv2d layout."""
    Cout, Cin, kh, kw = weight.shape
    K, N = kh * kw * Cin, Cout
    w = jnp.transpose(weight, (2, 3, 1, 0)).reshape(K, N)     # (ky,kx,ci) x co
    _, Kp, _, Np = _gemm_tiles(K, N)
    w_p = jnp.zeros((Kp, Np), jnp.bfloat16).at[:K, :N].set(w.astype(jnp.bfloat16))
    b_p = jnp.zeros((1, Np), jnp.float32).at[0, :N].set(bias.astype(jnp.float32))
    return dict(w=w_p, b=b_p, K=K, N=N, kh=kh, kw=kw, cout=Cout,
                stride=stride, padding=padding)


def prep_deconv_s4(weight, bias):
    """weight: (Cin, Cout, 8, 8), PyTorch ConvTranspose2d layout; stride=4,
    padding=2 (the only transposed conv the module uses).

    Phase decomposition: output pixel y = 4*j0 + ry - 2 (j0 in [0,H], ry in
    [0,4)) depends only on input rows j0-1, j0 through kernel taps ky = ry+4,
    ry — i.e. a 2x2 sub-kernel per phase."""
    Cin, Cout, kh, kw = weight.shape
    assert kh == 8 and kw == 8
    # (ci, co, my, ry, mx, rx) with ky = 4*my + ry, kx = 4*mx + rx
    w6 = weight.reshape(Cin, Cout, 2, 4, 2, 4)
    # window tap dy = 1 - my  (dy=0 hits ky=ry+4, dy=1 hits ky=ry); same in x
    w6 = jnp.flip(w6, axis=(2, 4))
    # -> (dy, dx, ci, ry, rx, co) -> (K = 4*Cin, N = 16*Cout)
    w = jnp.transpose(w6, (2, 4, 0, 3, 5, 1)).reshape(4 * Cin, 16 * Cout)
    K, N = 4 * Cin, 16 * Cout
    b16 = jnp.tile(bias.astype(jnp.float32), 16)
    _, Kp, _, Np = _gemm_tiles(K, N)
    w_p = jnp.zeros((Kp, Np), jnp.bfloat16).at[:K, :N].set(w.astype(jnp.bfloat16))
    b_p = jnp.zeros((1, Np), jnp.float32).at[0, :N].set(b16)
    return dict(w=w_p, b=b_p, K=K, N=N, cout=Cout)


# ---------------------------------------------------------------------------
# Conv / ConvTranspose wrappers (plain-JAX patch glue around the Pallas GEMM)
# ---------------------------------------------------------------------------
def conv2d(x, p, act=None, alpha=PRELU_ALPHA):
    kh, kw, stride, pad, Cout = p["kh"], p["kw"], p["stride"], p["padding"], p["cout"]
    xh = jnp.transpose(x, (0, 2, 3, 1)).astype(jnp.bfloat16)          # NHWC bf16
    if pad:
        xh = jnp.pad(xh, ((0, 0), (pad, pad), (pad, pad), (0, 0)))
    B, Hp, Wp_, C = xh.shape
    Ho = (Hp - kh) // stride + 1
    Wo = (Wp_ - kw) // stride + 1
    cols = [xh[:, ky:ky + (Ho - 1) * stride + 1:stride,
                 kx:kx + (Wo - 1) * stride + 1:stride, :]
            for ky in range(kh) for kx in range(kw)]
    a = jnp.stack(cols, axis=3).reshape(B * Ho * Wo, kh * kw * C)
    out = matmul_bias_act(a, p["w"], p["b"], p["K"], p["N"], act=act, alpha=alpha)
    return jnp.transpose(out.reshape(B, Ho, Wo, Cout), (0, 3, 1, 2))


def deconv_s4(x, p, act="prelu", alpha=PRELU_ALPHA):
    """ConvTranspose2d(k=8, stride=4, padding=2) via sub-pixel phase GEMM."""
    B, Cin, H, W = x.shape
    Cout = p["cout"]
    xh = jnp.transpose(x, (0, 2, 3, 1)).astype(jnp.bfloat16)          # NHWC bf16
    xp = jnp.pad(xh, ((0, 0), (1, 1), (1, 1), (0, 0)))
    # 2x2 sliding windows, stride 1 -> (H+1) x (W+1) window starts
    taps = [xp[:, dy:dy + H + 1, dx:dx + W + 1, :]
            for dy in (0, 1) for dx in (0, 1)]
    a = jnp.stack(taps, axis=3).reshape(B * (H + 1) * (W + 1), 4 * Cin)
    out = matmul_bias_act(a, p["w"], p["b"], p["K"], p["N"], act=act, alpha=alpha)
    # (b, j0, k0, ry, rx, co): output pixel y = 4*j0 + ry - 2, x = 4*k0 + rx - 2
    out = out.reshape(B, H + 1, W + 1, 4, 4, Cout)
    out = jnp.transpose(out, (0, 1, 3, 2, 4, 5))          # (b, j0, ry, k0, rx, co)
    out = out.reshape(B, 4 * (H + 1), 4 * (W + 1), Cout)
    out = out[:, 2:2 + 4 * H, 2:2 + 4 * W, :]             # crop the padding=2 border
    return jnp.transpose(out, (0, 3, 1, 2))               # NCHW


# ---------------------------------------------------------------------------
# Module forward (mirrors the PyTorch graph)
# ---------------------------------------------------------------------------
def up_block_fwd(p, x):
    h0 = deconv_s4(x, p["up1"], act="prelu")
    l0 = conv2d(h0, p["up2"], act="prelu")
    h1 = deconv_s4(l0 - x, p["up3"], act="prelu")
    return h1 + h0


def down_block_fwd(p, x):
    l0 = conv2d(x, p["down1"], act="prelu")
    h0 = deconv_s4(l0, p["down2"], act="prelu")
    l1 = conv2d(h0 - x, p["down3"], act="prelu")
    return l1 + l0


def downscale_block_fwd(p, x, small):
    x = conv2d(x, p["conv33"], act=None)                  # plain Conv2d, no act
    x = jnp.concatenate([x, small], axis=1)
    x = conv2d(x, p["conv11"], act=None)                  # plain Conv2d, no act
    x = up_block_fwd(p["up_block"], x)
    x = down_block_fwd(p["down_block"], x)
    return x


# ---------------------------------------------------------------------------
# Deterministic parameter construction (GEMM-ready, padded once)
# ---------------------------------------------------------------------------
class ParamGen:
    def __init__(self, seed=0):
        self.key = jax.random.PRNGKey(seed)

    def _next(self):
        self.key, k = jax.random.split(self.key)
        return k

    def conv(self, cin, cout, k, stride, padding):
        fan_in = cin * k * k
        w = jax.random.normal(self._next(), (cout, cin, k, k),
                              jnp.float32) / math.sqrt(fan_in)
        b = 0.01 * jax.random.normal(self._next(), (cout,), jnp.float32)
        return prep_conv(w, b, stride, padding)

    def deconv_s4(self, cin, cout):
        fan_in = cin * 8 * 8
        w = jax.random.normal(self._next(), (cin, cout, 8, 8),
                              jnp.float32) / math.sqrt(fan_in)
        b = 0.01 * jax.random.normal(self._next(), (cout,), jnp.float32)
        return prep_deconv_s4(w, b)


def init_downscale_block(in_channels, seed=0):
    pg = ParamGen(seed)
    nf = 2 * in_channels
    return {
        "conv33": pg.conv(in_channels, nf, 3, stride=2, padding=1),
        "conv11": pg.conv(nf + 3, nf, 1, stride=1, padding=0),
        "up_block": {
            "up1": pg.deconv_s4(nf, nf),
            "up2": pg.conv(nf, nf, 8, stride=4, padding=2),
            "up3": pg.deconv_s4(nf, nf),
        },
        "down_block": {
            "down1": pg.conv(nf, nf, 8, stride=4, padding=2),
            "down2": pg.deconv_s4(nf, nf),
            "down3": pg.conv(nf, nf, 8, stride=4, padding=2),
        },
    }


# ---------------------------------------------------------------------------
if __name__ == "__main__":
    IN_CH = 4
    B, H, W = 2, 16, 16

    params = init_downscale_block(IN_CH, seed=0)

    kx, ks = jax.random.split(jax.random.PRNGKey(0))
    x = jax.random.normal(kx, (B, IN_CH, H, W), jnp.float32)
    small = jax.random.normal(ks, (B, 3, H // 2, W // 2), jnp.float32)

    # Close over params so layer hyper-parameters stay static under jit and
    # the pre-padded GEMM weights are baked in (no per-call re-padding).
    fwd = jax.jit(functools.partial(downscale_block_fwd, params))
    out = jax.block_until_ready(fwd(x, small))

    assert out.shape == (B, 2 * IN_CH, H // 2, W // 2), out.shape
    assert bool(jnp.all(jnp.isfinite(out)))
    print("KERNEL_OK")
</pallas_src>

<mosaic_0001>
module attributes {stable_mosaic.version = 11 : i64} {
  func.func @_mm_kernel_1k(%arg0: i32, %arg1: i32, %arg2: i32, %arg3: memref<128x128xbf16, #tpu.memory_space<vmem>>, %arg4: memref<128x128xbf16, #tpu.memory_space<vmem>>, %arg5: memref<1x128xf32, #tpu.memory_space<vmem>>, %arg6: memref<128x128xf32, #tpu.memory_space<vmem>>) attributes {dimension_semantics = [#tpu.dimension_semantics<parallel>, #tpu.dimension_semantics<parallel>, #tpu.dimension_semantics<arbitrary>], iteration_bounds = array<i64: 1, 1, 1>, scalar_prefetch = 0 : i64, scratch_operands = 0 : i64, tpu.core_type = #tpu.core_type<tc>, window_params = [{transform_indices = @transform_0, window_bounds = array<i64: 128, 128>}, {transform_indices = @transform_1, window_bounds = array<i64: 128, 128>}, {transform_indices = @transform_2, window_bounds = array<i64: 1, 128>}, {transform_indices = @transform_3, window_bounds = array<i64: 128, 128>}]} {
    %c0 = arith.constant 0 : index
    %c0_0 = arith.constant 0 : index
    %0 = vector.load %arg3[%c0, %c0_0] : memref<128x128xbf16, #tpu.memory_space<vmem>>, vector<128x128xbf16>
    %c0_1 = arith.constant 0 : index
    %c0_2 = arith.constant 0 : index
    %1 = vector.load %arg4[%c0_1, %c0_2] : memref<128x128xbf16, #tpu.memory_space<vmem>>, vector<128x128xbf16>
    %cst = arith.constant dense<0.000000e+00> : vector<128x128xf32>
    %2 = tpu.matmul %0, %1, %cst {dimension_numbers = #tpu.dot_dimension_numbers<[1], [0], [0], [1], [0, 0, 1, 1], [], []>} : vector<128x128xbf16>, vector<128x128xbf16>, vector<128x128xf32> -> vector<128x128xf32>
    %c0_3 = arith.constant 0 : index
    %c0_4 = arith.constant 0 : index
    %3 = vector.load %arg5[%c0_3, %c0_4] : memref<1x128xf32, #tpu.memory_space<vmem>>, vector<1x128xf32>
    %4 = vector.broadcast %3 : vector<1x128xf32> to vector<128x128xf32>
    %5 = arith.addf %2, %4 : vector<128x128xf32>
    %c0_5 = arith.constant 0 : index
    %c0_6 = arith.constant 0 : index
    %6 = vector.load %arg6[%c0_5, %c0_6] : memref<128x128xf32, #tpu.memory_space<vmem>>, vector<128x128xf32>
    tpu.vector_store %arg6[%c0_5, %c0_6], %5 {strides = array<i32>} : memref<128x128xf32, #tpu.memory_space<vmem>>, vector<128x128xf32>,
    return
  }
  func.func @transform_0(%arg0: i32, %arg1: i32, %arg2: i32) -> (i32, i32) {
    %c0_i32 = arith.constant 0 : i32
    return %arg0, %arg2 : i32, i32
  }
  func.func @transform_1(%arg0: i32, %arg1: i32, %arg2: i32) -> (i32, i32) {
    %c0_i32 = arith.constant 0 : i32
    return %arg2, %arg1 : i32, i32
  }
  func.func @transform_2(%arg0: i32, %arg1: i32, %arg2: i32) -> (i32, i32) {
    %c0_i32 = arith.constant 0 : i32
    %c0_i32_0 = arith.constant 0 : i32
    return %c0_i32, %arg1 : i32, i32
  }
  func.func @transform_3(%arg0: i32, %arg1: i32, %arg2: i32) -> (i32, i32) {
    %c0_i32 = arith.constant 0 : i32
    return %arg0, %arg1 : i32, i32
  }
}

module attributes {stable_mosaic.version = 11 : i64} {
  func.func @_mm_kernel_1k(%arg0: i32, %arg1: i32, %arg2: i32, %arg3: memref<128x128xbf16, #tpu.memory_space<vmem>>, %arg4: memref<128x128xbf16, #tpu.memory_space<vmem>>, %arg5: memref<1x128xf32, #tpu.memory_space<vmem>>, %arg6: memref<128x128xf32, #tpu.memory_space<vmem>>) attributes {dimension_semantics = [#tpu.dimension_semantics<parallel>, #tpu.dimension_semantics<parallel>, #tpu.dimension_semantics<arbitrary>], iteration_bounds = array<i64: 1, 1, 1>, scalar_prefetch = 0 : i64, scratch_operands = 0 : i64, tpu.core_type = #tpu.core_type<tc>, window_params = [{transform_indices = @transform_0, window_bounds = array<i64: 128, 128>}, {transform_indices = @transform_1, window_bounds = array<i64: 128, 128>}, {transform_indices = @transform_2, window_bounds = array<i64: 1, 128>}, {transform_indices = @transform_3, window_bounds = array<i64: 128, 128>}]} {
    %c0 = arith.constant 0 : index
    %c0_0 = arith.constant 0 : index
    %0 = vector.load %arg3[%c0, %c0_0] : memref<128x128xbf16, #tpu.memory_space<vmem>>, vector<128x128xbf16>
    %c0_1 = arith.constant 0 : index
    %c0_2 = arith.constant 0 : index
    %1 = vector.load %arg4[%c0_1, %c0_2] : memref<128x128xbf16, #tpu.memory_space<vmem>>, vector<128x128xbf16>
    %cst = arith.constant dense<0.000000e+00> : vector<128x128xf32>
    %2 = tpu.matmul %0, %1, %cst {dimension_numbers = #tpu.dot_dimension_numbers<[1], [0], [0], [1], [0, 0, 1, 1], [], []>} : vector<128x128xbf16>, vector<128x128xbf16>, vector<128x128xf32> -> vector<128x128xf32>
    %c0_3 = arith.constant 0 : index
    %c0_4 = arith.constant 0 : index
    %3 = vector.load %arg5[%c0_3, %c0_4] : memref<1x128xf32, #tpu.memory_space<vmem>>, vector<1x128xf32>
    %4 = vector.broadcast %3 : vector<1x128xf32> to vector<128x128xf32>
    %5 = arith.addf %2, %4 : vector<128x128xf32>
    %c0_5 = arith.constant 0 : index
    %c0_6 = arith.constant 0 : index
    %6 = vector.load %arg6[%c0_5, %c0_6] : memref<128x128xf32, #tpu.memory_space<vmem>>, vector<128x128xf32>
    tpu.vector_store %arg6[%c0_5, %c0_6], %5 {strides = array<i32>} : memref<128x128xf32, #tpu.memory_space<vmem>>, vector<128x128xf32>,
    return
  }
  func.func @transform_0(%arg0: i32, %arg1: i32, %arg2: i32) -> (i32, i32) {
    %c0_i32 = arith.constant 0 : i32
    return %arg0, %arg2 : i32, i32
  }
  func.func @transform_1(%arg0: i32, %arg1: i32, %arg2: i32) -> (i32, i32) {
    %c0_i32 = arith.constant 0 : i32
    return %arg2, %arg1 : i32, i32
  }
  func.func @transform_2(%arg0: i32, %arg1: i32, %arg2: i32) -> (i32, i32) {
    %c0_i32 = arith.constant 0 : i32
    %c0_i32_0 = arith.constant 0 : i32
    return %c0_i32, %arg1 : i32, i32
  }
  func.func @transform_3(%arg0: i32, %arg1: i32, %arg2: i32) -> (i32, i32) {
    %c0_i32 = arith.constant 0 : i32
    return %arg0, %arg1 : i32, i32
  }
}

module attributes {stable_mosaic.version = 11 : i64} {
  func.func @_mm_kernel_1k(%arg0: i32, %arg1: i32, %arg2: i32, %arg3: memref<176x128xbf16, #tpu.memory_space<vmem>>, %arg4: memref<128x128xbf16, #tpu.memory_space<vmem>>, %arg5: memref<1x128xf32, #tpu.memory_space<vmem>>, %arg6: memref<176x128xf32, #tpu.memory_space<vmem>>) attributes {dimension_semantics = [#tpu.dimension_semantics<parallel>, #tpu.dimension_semantics<parallel>, #tpu.dimension_semantics<arbitrary>], iteration_bounds = array<i64: 1, 1, 1>, scalar_prefetch = 0 : i64, scratch_operands = 0 : i64, tpu.core_type = #tpu.core_type<tc>, window_params = [{transform_indices = @transform_0, window_bounds = array<i64: 176, 128>}, {transform_indices = @transform_1, window_bounds = array<i64: 128, 128>}, {transform_indices = @transform_2, window_bounds = array<i64: 1, 128>}, {transform_indices = @transform_3, window_bounds = array<i64: 176, 128>}]} {
    %c0 = arith.constant 0 : index
    %c0_0 = arith.constant 0 : index
    %0 = vector.load %arg3[%c0, %c0_0] : memref<176x128xbf16, #tpu.memory_space<vmem>>, vector<176x128xbf16>
    %c0_1 = arith.constant 0 : index
    %c0_2 = arith.constant 0 : index
    %1 = vector.load %arg4[%c0_1, %c0_2] : memref<128x128xbf16, #tpu.memory_space<vmem>>, vector<128x128xbf16>
    %cst = arith.constant dense<0.000000e+00> : vector<176x128xf32>
    %2 = tpu.matmul %0, %1, %cst {dimension_numbers = #tpu.dot_dimension_numbers<[1], [0], [0], [1], [0, 0, 1, 1], [], []>} : vector<176x128xbf16>, vector<128x128xbf16>, vector<176x128xf32> -> vector<176x128xf32>
    %c0_3 = arith.constant 0 : index
    %c0_4 = arith.constant 0 : index
    %3 = vector.load %arg5[%c0_3, %c0_4] : memref<1x128xf32, #tpu.memory_space<vmem>>, vector<1x128xf32>
    %4 = vector.broadcast %3 : vector<1x128xf32> to vector<176x128xf32>
    %5 = arith.addf %2, %4 : vector<176x128xf32>
    %cst_5 = arith.constant 0.000000e+00 : f32
    %6 = vector.broadcast %cst_5 : f32 to vector<176x128xf32>
    %7 = arith.cmpf oge, %5, %6 : vector<176x128xf32>
    %cst_6 = arith.constant 2.500000e-01 : f32
    %8 = vector.broadcast %cst_6 : f32 to vector<176x128xf32>
    %9 = arith.mulf %8, %5 : vector<176x128xf32>
    %10 = arith.select %7, %5, %9 : vector<176x128xi1>, vector<176x128xf32>
    %c0_7 = arith.constant 0 : index
    %c0_8 = arith.constant 0 : index
    %11 = vector.load %arg6[%c0_7, %c0_8] : memref<176x128xf32, #tpu.memory_space<vmem>>, vector<176x128xf32>
    tpu.vector_store %arg6[%c0_7, %c0_8], %10 {strides = array<i32>} : memref<176x128xf32, #tpu.memory_space<vmem>>, vector<176x128xf32>,
    return
  }
  func.func @transform_0(%arg0: i32, %arg1: i32, %arg2: i32) -> (i32, i32) {
    %c0_i32 = arith.constant 0 : i32
    return %arg0, %arg2 : i32, i32
  }
  func.func @transform_1(%arg0: i32, %arg1: i32, %arg2: i32) -> (i32, i32) {
    %c0_i32 = arith.constant 0 : i32
    return %arg2, %arg1 : i32, i32
  }
  func.func @transform_2(%arg0: i32, %arg1: i32, %arg2: i32) -> (i32, i32) {
    %c0_i32 = arith.constant 0 : i32
    %c0_i32_0 = arith.constant 0 : i32
    return %c0_i32, %arg1 : i32, i32
  }
  func.func @transform_3(%arg0: i32, %arg1: i32, %arg2: i32) -> (i32, i32) {
    %c0_i32 = arith.constant 0 : i32
    return %arg0, %arg1 : i32, i32
  }
}

module attributes {stable_mosaic.version = 11 : i64} {
  func.func @_mm_kernel_1k(%arg0: i32, %arg1: i32, %arg2: i32, %arg3: memref<128x512xbf16, #tpu.memory_space<vmem>>, %arg4: memref<512x128xbf16, #tpu.memory_space<vmem>>, %arg5: memref<1x128xf32, #tpu.memory_space<vmem>>, %arg6: memref<128x128xf32, #tpu.memory_space<vmem>>) attributes {dimension_semantics = [#tpu.dimension_semantics<parallel>, #tpu.dimension_semantics<parallel>, #tpu.dimension_semantics<arbitrary>], iteration_bounds = array<i64: 1, 1, 1>, scalar_prefetch = 0 : i64, scratch_operands = 0 : i64, tpu.core_type = #tpu.core_type<tc>, window_params = [{transform_indices = @transform_0, window_bounds = array<i64: 128, 512>}, {transform_indices = @transform_1, window_bounds = array<i64: 512, 128>}, {transform_indices = @transform_2, window_bounds = array<i64: 1, 128>}, {transform_indices = @transform_3, window_bounds = array<i64: 128, 128>}]} {
    %c0 = arith.constant 0 : index
    %c0_0 = arith.constant 0 : index
    %0 = vector.load %arg3[%c0, %c0_0] : memref<128x512xbf16, #tpu.memory_space<vmem>>, vector<128x512xbf16>
    %c0_1 = arith.constant 0 : index
    %c0_2 = arith.constant 0 : index
    %1 = vector.load %arg4[%c0_1, %c0_2] : memref<512x128xbf16, #tpu.memory_space<vmem>>, vector<512x128xbf16>
    %cst = arith.constant dense<0.000000e+00> : vector<128x128xf32>
    %2 = tpu.matmul %0, %1, %cst {dimension_numbers = #tpu.dot_dimension_numbers<[1], [0], [0], [1], [0, 0, 1, 1], [], []>} : vector<128x512xbf16>, vector<512x128xbf16>, vector<128x128xf32> -> vector<128x128xf32>
    %c0_3 = arith.constant 0 : index
    %c0_4 = arith.constant 0 : index
    %3 = vector.load %arg5[%c0_3, %c0_4] : memref<1x128xf32, #tpu.memory_space<vmem>>, vector<1x128xf32>
    %4 = vector.broadcast %3 : vector<1x128xf32> to vector<128x128xf32>
    %5 = arith.addf %2, %4 : vector<128x128xf32>
    %cst_5 = arith.constant 0.000000e+00 : f32
    %6 = vector.broadcast %cst_5 : f32 to vector<128x128xf32>
    %7 = arith.cmpf oge, %5, %6 : vector<128x128xf32>
    %cst_6 = arith.constant 2.500000e-01 : f32
    %8 = vector.broadcast %cst_6 : f32 to vector<128x128xf32>
    %9 = arith.mulf %8, %5 : vector<128x128xf32>
    %10 = arith.select %7, %5, %9 : vector<128x128xi1>, vector<128x128xf32>
    %c0_7 = arith.constant 0 : index
    %c0_8 = arith.constant 0 : index
    %11 = vector.load %arg6[%c0_7, %c0_8] : memref<128x128xf32, #tpu.memory_space<vmem>>, vector<128x128xf32>
    tpu.vector_store %arg6[%c0_7, %c0_8], %10 {strides = array<i32>} : memref<128x128xf32, #tpu.memory_space<vmem>>, vector<128x128xf32>,
    return
  }
  func.func @transform_0(%arg0: i32, %arg1: i32, %arg2: i32) -> (i32, i32) {
    %c0_i32 = arith.constant 0 : i32
    return %arg0, %arg2 : i32, i32
  }
  func.func @transform_1(%arg0: i32, %arg1: i32, %arg2: i32) -> (i32, i32) {
    %c0_i32 = arith.constant 0 : i32
    return %arg2, %arg1 : i32, i32
  }
  func.func @transform_2(%arg0: i32, %arg1: i32, %arg2: i32) -> (i32, i32) {
    %c0_i32 = arith.constant 0 : i32
    %c0_i32_0 = arith.constant 0 : i32
    return %c0_i32, %arg1 : i32, i32
  }
  func.func @transform_3(%arg0: i32, %arg1: i32, %arg2: i32) -> (i32, i32) {
    %c0_i32 = arith.constant 0 : i32
    return %arg0, %arg1 : i32, i32
  }
}

</mosaic_0001>

<bundles_post_ra>
// kernel: downscale_block_fwd.9
= control target key start
LH: loop header
LB: loop body
LE: loop exit
PB: predicated region body
PF: predicated region fallthrough
CT: control target
= control target key end

     0   :  { %8 = vsyncpa [#allocation3], 0  ;;  %s400_s12 = smov [#allocation2]   ;;  %s520_s0 = inlined_call_operand.vmem [shape: bf16[128,128], index: 0, kind: input, shape index: {}]   ;;  %s521_s1 = inlined_call_operand.vmem [shape: bf16[128,128], index: 1, kind: input, shape index: {}]   ;;  %s522_s2 = inlined_call_operand.hbm [shape: f32[1,128], index: 2, kind: input, shape index: {}]   ;;  %s523_s3 = inlined_call_operand.vmem [shape: f32[128,128], index: 3, kind: output, shape index: {}]  }
   0x1   :  { %s19_s13 = sshll.u32 %s400_s12, 4  ;;  %s20_s13 = int_to_ptr.vmem [resolvable:$true] %s19_s13 }
   0x2   :  { %s386_s14 = scalar_lea.vmem %s20_s13, 16  ;;  %s390_s15 = scalar_lea.vmem %s20_s13, 32 }
   0x3   :  { %p387_p0 = scmp.ne.s32.totalorder %s20_s13, %s386_s14  ;;  %p391_p1 = scmp.lt.s32.totalorder %s20_s13, %s20_s13 }
   0x4   :  { %p392_p2 = scmp.lt.s32.totalorder %s390_s15, %s386_s14 }
   0x6   :  { %p393_p3 = por %p392_p2, %p391_p1 }
   0x8   :  { %p394_p4 = pnand %p393_p3, %p387_p0 }
   0xa   :  { %397 = shalt.err (!%p394_p4)
}
   0xb   :  { %22 = dma.hbm_to_vmem [thread:$0]  %s522_s2, 16, %s20_s13, [#allocation3]  }
   0xc   :  { %398 = dma.done.wait [#allocation3], 16  }
   0xd   :  { %399 = vsyncadd [#allocation3], 4294967280  ;;  %v362_v0 = vld [vmem:[%s521_s1 + $0x38] sm:$0xff]   ;;  %v363_v1 = vld [vmem:[%s521_s1 + $0x30] sm:$0xff]  }
   0xe   :  { %313 = vmatprep.subr.bf16.mxu0 %v362_v0  ;;  %345 = vmatprep.subr.bf16.mxu1 %v362_v0  ;;  %v364_v2 = vld [vmem:[%s521_s1 + $0x28] sm:$0xff]   ;;  %v365_v3 = vld [vmem:[%s521_s1 + $0x20] sm:$0xff]   ;;  %v366_v6 = vld [vmem:[%s521_s1 + $0x18] sm:$0xff]  }
   0xf   :  { %314 = vmatpush3.bf16.msra.mxu0 %v362_v0  ;;  %353 = vmatpush3.bf16.msra.mxu1 %v362_v0  ;;  %v370_v4 = vld [vmem:[%s520_s0] sm:$0xff]   ;;  %v367_v7 = vld [vmem:[%s521_s1 + $0x10] sm:$0xff]   ;;  %v368_v8 = vld [vmem:[%s521_s1 + $0x8] sm:$0xff]  }
  0x10   :  { %315 = vmatprep.subr.bf16.mxu0 %v363_v1  ;;  %346 = vmatprep.subr.bf16.mxu1 %v363_v1  ;;  %v371_v5 = vld [vmem:[%s520_s0 + $0x20] sm:$0xff]   ;;  %v372_v10 = vld [vmem:[%s520_s0 + $0x8] sm:$0xff]   ;;  %v374_v12 = vld [vmem:[%s520_s0 + $0x10] sm:$0xff]  }
  0x11   :  { %329 = vmatprep.mubr.bf16.mxu0 %v370_v4  ;;  %337 = vmatprep.mubr.bf16.mxu1 %v371_v5  ;;  %v369_v9 = vld [vmem:[%s521_s1] sm:$0xff]   ;;  %v373_v11 = vld [vmem:[%s520_s0 + $0x28] sm:$0xff]   ;;  %v375_v13 = vld [vmem:[%s520_s0 + $0x30] sm:$0xff]  }
  0x12   :  { %v376_v14 = vld [vmem:[%s520_s0 + $0x18] sm:$0xff]   ;;  %v280_v16 = vld [vmem:[#allocation2] ss:$0 sm:$0xff] }
  0x13   :  { %316 = vmatpush3.bf16.msra.mxu0 %v363_v1  ;;  %354 = vmatpush3.bf16.msra.mxu1 %v363_v1  ;;  %v377_v15 = vld [vmem:[%s520_s0 + $0x38] sm:$0xff]  }
  0x14   :  { %317 = vmatprep.subr.bf16.mxu0 %v364_v2  ;;  %347 = vmatprep.subr.bf16.mxu1 %v364_v2 }
  0x17   :  { %318 = vmatpush3.bf16.msra.mxu0 %v364_v2  ;;  %355 = vmatpush3.bf16.msra.mxu1 %v364_v2 }
  0x18   :  { %319 = vmatprep.subr.bf16.mxu0 %v365_v3  ;;  %348 = vmatprep.subr.bf16.mxu1 %v365_v3 }
  0x1b   :  { %320 = vmatpush3.bf16.msra.mxu0 %v365_v3  ;;  %356 = vmatpush3.bf16.msra.mxu1 %v365_v3 }
  0x1c   :  { %321 = vmatprep.subr.bf16.mxu0 %v366_v6  ;;  %349 = vmatprep.subr.bf16.mxu1 %v366_v6 }
  0x1f   :  { %322 = vmatpush3.bf16.msra.mxu0 %v366_v6  ;;  %357 = vmatpush3.bf16.msra.mxu1 %v366_v6 }
  0x20   :  { %323 = vmatprep.subr.bf16.mxu0 %v367_v7  ;;  %350 = vmatprep.subr.bf16.mxu1 %v367_v7 }
  0x23   :  { %324 = vmatpush3.bf16.msra.mxu0 %v367_v7  ;;  %358 = vmatpush3.bf16.msra.mxu1 %v367_v7 }
  0x24   :  { %325 = vmatprep.subr.bf16.mxu0 %v368_v8  ;;  %351 = vmatprep.subr.bf16.mxu1 %v368_v8 }
  0x27   :  { %326 = vmatpush3.bf16.msra.mxu0 %v368_v8  ;;  %359 = vmatpush3.bf16.msra.mxu1 %v368_v8 }
  0x28   :  { %327 = vmatprep.subr.bf16.mxu0 %v369_v9  ;;  %352 = vmatprep.subr.bf16.mxu1 %v369_v9 }
  0x2b   :  { %328 = vmatpush3.bf16.msra.mxu0 %v369_v9  ;;  %360 = vmatpush3.bf16.msra.mxu1 %v369_v9 }
  0x2e   :  { %330 = vmatmul.mubr.bf16.vlgmr.msra.gmra.mxu0 %v372_v10  ;;  %338 = vmatmul.mubr.bf16.vlgmr.msra.gmra.mxu1 %v373_v11 }
  0x2f   :  { %333 = vmatprep.mubr.bf16.mxu0 %v374_v12  ;;  %341 = vmatprep.mubr.bf16.mxu1 %v375_v13 }
  0x36   :  { %334 = vmatmul.mubr.bf16.gmra.mxu0 %v376_v14  ;;  %342 = vmatmul.mubr.bf16.gmra.mxu1 %v377_v15 }
  0xee   :  { %v331_v17 = vpop.f32.mrf.mxu0  ;;  %v339_v18 = vpop.f32.mrf.mxu1 }
  0xef   :  { %v205_v19 = vadd.f32 %v331_v17, %v280_v16  ;;  %v237_v20 = vadd.f32 %v339_v18, %v280_v16 }
  0xf0   :  { %v196_v21 = vpop.f32.mrf.mxu0  ;;  %v228_v22 = vpop.f32.mrf.mxu1 }
  0xf1   :  { %261 = vst [vmem:[%s523_s3 + $0x10] sm:$0xff] %v205_v19  ;;  %269 = vst [vmem:[%s523_s3 + $0x50] sm:$0xff] %v237_v20  ;;  %v197_v23 = vadd.f32 %v280_v16, %v196_v21  ;;  %v229_v24 = vadd.f32 %v280_v16, %v228_v22 }
  0xf2   :  { %v332_v25 = vpop.f32.mrf.mxu0  ;;  %v340_v26 = vpop.f32.mrf.mxu1 }
  0xf3   :  { %259 = vst [vmem:[%s523_s3] sm:$0xff] %v197_v23  ;;  %267 = vst [vmem:[%s523_s3 + $0x40] sm:$0xff] %v229_v24  ;;  %v208_v27 = vadd.f32 %v332_v25, %v280_v16  ;;  %v240_v28 = vadd.f32 %v340_v26, %v280_v16 }
  0xf4   :  { %v199_v29 = vpop.f32.mrf.mxu0  ;;  %v231_v30 = vpop.f32.mrf.mxu1 }
  0xf5   :  { %262 = vst [vmem:[%s523_s3 + $0x18] sm:$0xff] %v208_v27  ;;  %270 = vst [vmem:[%s523_s3 + $0x58] sm:$0xff] %v240_v28  ;;  %v200_v31 = vadd.f32 %v280_v16, %v199_v29  ;;  %v232_v32 = vadd.f32 %v280_v16, %v231_v30 }
  0xf6   :  { %v335_v33 = vpop.f32.mrf.mxu0  ;;  %v343_v34 = vpop.f32.mrf.mxu1 }
  0xf7   :  { %260 = vst [vmem:[%s523_s3 + $0x8] sm:$0xff] %v200_v31  ;;  %268 = vst [vmem:[%s523_s3 + $0x48] sm:$0xff] %v232_v32  ;;  %v221_v35 = vadd.f32 %v335_v33, %v280_v16  ;;  %v253_v36 = vadd.f32 %v343_v34, %v280_v16 }
  0xf8   :  { %v212_v37 = vpop.f32.mrf.mxu0  ;;  %v244_v38 = vpop.f32.mrf.mxu1 }
  0xf9   :  { %265 = vst [vmem:[%s523_s3 + $0x30] sm:$0xff] %v221_v35  ;;  %273 = vst [vmem:[%s523_s3 + $0x70] sm:$0xff] %v253_v36  ;;  %v213_v39 = vadd.f32 %v280_v16, %v212_v37  ;;  %v245_v40 = vadd.f32 %v280_v16, %v244_v38 }
  0xfa   :  { %v336_v41 = vpop.f32.mrf.mxu0  ;;  %v344_v42 = vpop.f32.mrf.mxu1 }
  0xfb   :  { %263 = vst [vmem:[%s523_s3 + $0x20] sm:$0xff] %v213_v39  ;;  %271 = vst [vmem:[%s523_s3 + $0x60] sm:$0xff] %v245_v40  ;;  %v224_v43 = vadd.f32 %v336_v41, %v280_v16  ;;  %v256_v44 = vadd.f32 %v344_v42, %v280_v16 }
  0xfc   :  { %v215_v45 = vpop.f32.mrf.mxu0  ;;  %v247_v46 = vpop.f32.mrf.mxu1 }
  0xfd   :  { %266 = vst [vmem:[%s523_s3 + $0x38] sm:$0xff] %v224_v43  ;;  %274 = vst [vmem:[%s523_s3 + $0x78] sm:$0xff] %v256_v44  ;;  %v216_v47 = vadd.f32 %v280_v16, %v215_v45  ;;  %v248_v48 = vadd.f32 %v280_v16, %v247_v46 }
  0xff   :  { %264 = vst [vmem:[%s523_s3 + $0x28] sm:$0xff] %v216_v47  ;;  %272 = vst [vmem:[%s523_s3 + $0x68] sm:$0xff] %v248_v48 }
 0x100   :  { %279 = vsyncpa [#allocation3], 1 }

// kernel: downscale_block_fwd.8
= control target key start
LH: loop header
LB: loop body
LE: loop exit
PB: predicated region body
PF: predicated region fallthrough
CT: control target
= control target key end

     0   :  { %8 = vsyncpa [#allocation3], 0  ;;  %s542_s0 = inlined_call_operand.vmem [shape: bf16[128,128], index: 0, kind: input, shape index: {}]   ;;  %s543_s1 = inlined_call_operand.hbm [shape: bf16[128,128], index: 1, kind: input, shape index: {}]   ;;  %s544_s2 = inlined_call_operand.hbm [shape: f32[1,128], index: 2, kind: input, shape index: {}]   ;;  %s545_s3 = inlined_call_operand.vmem [shape: f32[128,128], index: 3, kind: output, shape index: {}]  }
   0x1   :  { %9 = vsyncpa [#allocation5], 0  ;;  %s440_s12 = smov [#allocation2]  }
   0x2   :  { %s17_s13 = sshll.u32 %s440_s12, 4  ;;  %s18_s13 = int_to_ptr.vmem [resolvable:$true] %s17_s13 }
   0x3   :  { %s404_s14 = scalar_lea.vmem %s18_s13, 1024  ;;  %p409_p1 = scmp.lt.s32.totalorder %s18_s13, %s18_s13 }
   0x4   :  { %p405_p0 = scmp.ne.s32.totalorder %s18_s13, %s404_s14  ;;  %p410_p2 = scmp.lt.s32.totalorder %s404_s14, %s404_s14 }
   0x6   :  { %p411_p3 = por %p410_p2, %p409_p1 }
   0x8   :  { %p412_p4 = pnand %p411_p3, %p405_p0 }
   0xa   :  { %415 = shalt.err (!%p412_p4)
}
   0xb   :  { %s441_s15 = smov 64   ;;  %s442_s16 = smov 4  }
   0xc   :  { %23 = dma.hbm_to_vmem [thread:$0]  %s543_s1, 1024, %s18_s13, [#allocation3], %s441_s15, %s441_s15, %s442_s16  }
   0xd   :  { %s443_s19 = smov [#allocation4]  }
   0xe   :  { %s30_s20 = sshll.u32 %s443_s19, 4  ;;  %s31_s20 = int_to_ptr.vmem [resolvable:$true] %s30_s20 }
   0xf   :  { %s424_s21 = scalar_lea.vmem %s31_s20, 16  ;;  %s428_s22 = scalar_lea.vmem %s31_s20, 32 }
  0x10   :  { %p425_p5 = scmp.ne.s32.totalorder %s31_s20, %s424_s21  ;;  %p429_p6 = scmp.lt.s32.totalorder %s31_s20, %s31_s20 }
  0x11   :  { %p430_p7 = scmp.lt.s32.totalorder %s428_s22, %s424_s21 }
  0x13   :  { %p431_p8 = por %p430_p7, %p429_p6 }
  0x15   :  { %p432_p9 = pnand %p431_p8, %p425_p5 }
  0x17   :  { %435 = shalt.err (!%p432_p9)
}
  0x18   :  { %33 = dma.hbm_to_vmem [thread:$0]  %s544_s2, 16, %s31_s20, [#allocation5]  }
  0x19   :  { %436 = dma.done.wait [#allocation3], 1024  }
  0x1a   :  { %437 = vsyncadd [#allocation3], 4294966272 }
  0x1b   :  { %438 = dma.done.wait [#allocation5], 16  }
  0x1c   :  { %439 = vsyncadd [#allocation5], 4294967280  ;;  %v380_v0 = vld [vmem:[#allocation2 + $0x38] sm:$0xff]   ;;  %v381_v1 = vld [vmem:[#allocation2 + $0x30] sm:$0xff]  }
  0x1d   :  { %328 = vmatprep.subr.bf16.mxu0 %v380_v0  ;;  %360 = vmatprep.subr.bf16.mxu1 %v380_v0  ;;  %v382_v2 = vld [vmem:[#allocation2 + $0x28] sm:$0xff]   ;;  %v383_v3 = vld [vmem:[#allocation2 + $0x20] sm:$0xff]   ;;  %v384_v6 = vld [vmem:[#allocation2 + $0x18] sm:$0xff]  }
  0x1e   :  { %329 = vmatpush3.bf16.msra.mxu0 %v380_v0  ;;  %368 = vmatpush3.bf16.msra.mxu1 %v380_v0  ;;  %v388_v4 = vld [vmem:[%s542_s0] sm:$0xff]   ;;  %v385_v7 = vld [vmem:[#allocation2 + $0x10] sm:$0xff]   ;;  %v386_v8 = vld [vmem:[#allocation2 + $0x8] sm:$0xff]  }
  0x1f   :  { %330 = vmatprep.subr.bf16.mxu0 %v381_v1  ;;  %361 = vmatprep.subr.bf16.mxu1 %v381_v1  ;;  %v389_v5 = vld [vmem:[%s542_s0 + $0x20] sm:$0xff]   ;;  %v390_v10 = vld [vmem:[%s542_s0 + $0x8] sm:$0xff]   ;;  %v392_v12 = vld [vmem:[%s542_s0 + $0x10] sm:$0xff]  }
  0x20   :  { %344 = vmatprep.mubr.bf16.mxu0 %v388_v4  ;;  %352 = vmatprep.mubr.bf16.mxu1 %v389_v5  ;;  %v387_v9 = vld [vmem:[#allocation2] sm:$0xff]   ;;  %v391_v11 = vld [vmem:[%s542_s0 + $0x28] sm:$0xff]   ;;  %v393_v13 = vld [vmem:[%s542_s0 + $0x30] sm:$0xff]  }
  0x21   :  { %v394_v14 = vld [vmem:[%s542_s0 + $0x18] sm:$0xff]   ;;  %v295_v16 = vld [vmem:[#allocation4] ss:$0 sm:$0xff] }
  0x22   :  { %331 = vmatpush3.bf16.msra.mxu0 %v381_v1  ;;  %369 = vmatpush3.bf16.msra.mxu1 %v381_v1  ;;  %v395_v15 = vld [vmem:[%s542_s0 + $0x38] sm:$0xff]  }
  0x23   :  { %332 = vmatprep.subr.bf16.mxu0 %v382_v2  ;;  %362 = vmatprep.subr.bf16.mxu1 %v382_v2 }
  0x26   :  { %333 = vmatpush3.bf16.msra.mxu0 %v382_v2  ;;  %370 = vmatpush3.bf16.msra.mxu1 %v382_v2 }
  0x27   :  { %334 = vmatprep.subr.bf16.mxu0 %v383_v3  ;;  %363 = vmatprep.subr.bf16.mxu1 %v383_v3 }
  0x2a   :  { %335 = vmatpush3.bf16.msra.mxu0 %v383_v3  ;;  %371 = vmatpush3.bf16.msra.mxu1 %v383_v3 }
  0x2b   :  { %336 = vmatprep.subr.bf16.mxu0 %v384_v6  ;;  %364 = vmatprep.subr.bf16.mxu1 %v384_v6 }
  0x2e   :  { %337 = vmatpush3.bf16.msra.mxu0 %v384_v6  ;;  %372 = vmatpush3.bf16.msra.mxu1 %v384_v6 }
  0x2f   :  { %338 = vmatprep.subr.bf16.mxu0 %v385_v7  ;;  %365 = vmatprep.subr.bf16.mxu1 %v385_v7 }
  0x32   :  { %339 = vmatpush3.bf16.msra.mxu0 %v385_v7  ;;  %373 = vmatpush3.bf16.msra.mxu1 %v385_v7 }
  0x33   :  { %340 = vmatprep.subr.bf16.mxu0 %v386_v8  ;;  %366 = vmatprep.subr.bf16.mxu1 %v386_v8 }
  0x36   :  { %341 = vmatpush3.bf16.msra.mxu0 %v386_v8  ;;  %374 = vmatpush3.bf16.msra.mxu1 %v386_v8 }
  0x37   :  { %342 = vmatprep.subr.bf16.mxu0 %v387_v9  ;;  %367 = vmatprep.subr.bf16.mxu1 %v387_v9 }
  0x3a   :  { %343 = vmatpush3.bf16.msra.mxu0 %v387_v9  ;;  %375 = vmatpush3.bf16.msra.mxu1 %v387_v9 }
  0x3d   :  { %345 = vmatmul.mubr.bf16.vlgmr.msra.gmra.mxu0 %v390_v10  ;;  %353 = vmatmul.mubr.bf16.vlgmr.msra.gmra.mxu1 %v391_v11 }
  0x3e   :  { %348 = vmatprep.mubr.bf16.mxu0 %v392_v12  ;;  %356 = vmatprep.mubr.bf16.mxu1 %v393_v13 }
  0x45   :  { %349 = vmatmul.mubr.bf16.gmra.mxu0 %v394_v14  ;;  %357 = vmatmul.mubr.bf16.gmra.mxu1 %v395_v15 }
  0xfd   :  { %v346_v17 = vpop.f32.mrf.mxu0  ;;  %v354_v18 = vpop.f32.mrf.mxu1 }
  0xfe   :  { %v219_v19 = vadd.f32 %v346_v17, %v295_v16  ;;  %v251_v20 = vadd.f32 %v354_v18, %v295_v16 }
  0xff   :  { %v210_v21 = vpop.f32.mrf.mxu0  ;;  %v242_v22 = vpop.f32.mrf.mxu1 }
 0x100   :  { %275 = vst [vmem:[%s545_s3 + $0x10] sm:$0xff] %v219_v19  ;;  %283 = vst [vmem:[%s545_s3 + $0x50] sm:$0xff] %v251_v20  ;;  %v211_v23 = vadd.f32 %v295_v16, %v210_v21  ;;  %v243_v24 = vadd.f32 %v295_v16, %v242_v22 }
 0x101   :  { %v347_v25 = vpop.f32.mrf.mxu0  ;;  %v355_v26 = vpop.f32.mrf.mxu1 }
 0x102   :  { %273 = vst [vmem:[%s545_s3] sm:$0xff] %v211_v23  ;;  %281 = vst [vmem:[%s545_s3 + $0x40] sm:$0xff] %v243_v24  ;;  %v222_v27 = vadd.f32 %v347_v25, %v295_v16  ;;  %v254_v28 = vadd.f32 %v355_v26, %v295_v16 }
 0x103   :  { %v213_v29 = vpop.f32.mrf.mxu0  ;;  %v245_v30 = vpop.f32.mrf.mxu1 }
 0x104   :  { %276 = vst [vmem:[%s545_s3 + $0x18] sm:$0xff] %v222_v27  ;;  %284 = vst [vmem:[%s545_s3 + $0x58] sm:$0xff] %v254_v28  ;;  %v214_v31 = vadd.f32 %v295_v16, %v213_v29  ;;  %v246_v32 = vadd.f32 %v295_v16, %v245_v30 }
 0x105   :  { %v350_v33 = vpop.f32.mrf.mxu0  ;;  %v358_v34 = vpop.f32.mrf.mxu1 }
 0x106   :  { %274 = vst [vmem:[%s545_s3 + $0x8] sm:$0xff] %v214_v31  ;;  %282 = vst [vmem:[%s545_s3 + $0x48] sm:$0xff] %v246_v32  ;;  %v235_v35 = vadd.f32 %v350_v33, %v295_v16  ;;  %v267_v36 = vadd.f32 %v358_v34, %v295_v16 }
 0x107   :  { %v226_v37 = vpop.f32.mrf.mxu0  ;;  %v258_v38 = vpop.f32.mrf.mxu1 }
 0x108   :  { %279 = vst [vmem:[%s545_s3 + $0x30] sm:$0xff] %v235_v35  ;;  %287 = vst [vmem:[%s545_s3 + $0x70] sm:$0xff] %v267_v36  ;;  %v227_v39 = vadd.f32 %v295_v16, %v226_v37  ;;  %v259_v40 = vadd.f32 %v295_v16, %v258_v38 }
 0x109   :  { %v351_v41 = vpop.f32.mrf.mxu0  ;;  %v359_v42 = vpop.f32.mrf.mxu1 }
 0x10a   :  { %277 = vst [vmem:[%s545_s3 + $0x20] sm:$0xff] %v227_v39  ;;  %285 = vst [vmem:[%s545_s3 + $0x60] sm:$0xff] %v259_v40  ;;  %v238_v43 = vadd.f32 %v351_v41, %v295_v16  ;;  %v270_v44 = vadd.f32 %v359_v42, %v295_v16 }
 0x10b   :  { %v229_v45 = vpop.f32.mrf.mxu0  ;;  %v261_v46 = vpop.f32.mrf.mxu1 }
 0x10c   :  { %280 = vst [vmem:[%s545_s3 + $0x38] sm:$0xff] %v238_v43  ;;  %288 = vst [vmem:[%s545_s3 + $0x78] sm:$0xff] %v270_v44  ;;  %v230_v47 = vadd.f32 %v295_v16, %v229_v45  ;;  %v262_v48 = vadd.f32 %v295_v16, %v261_v46 }
 0x10e   :  { %278 = vst [vmem:[%s545_s3 + $0x28] sm:$0xff] %v230_v47  ;;  %286 = vst [vmem:[%s545_s3 + $0x68] sm:$0xff] %v262_v48 }
 0x10f   :  { %293 = vsyncpa [#allocation3], 1 }
 0x110   :  { %294 = vsyncpa [#allocation5], 1 }

// kernel: downscale_block_fwd.10
= control target key start
LH: loop header
LB: loop body
LE: loop exit
PB: predicated region body
PF: predicated region fallthrough
CT: control target
= control target key end

     0   :  { %v523_v0 = vmov 0.0   ;;  %vm524_vm0 = vmmov 0   ;;  %s733_s1 = inlined_call_operand.vmem [shape: bf16[128,128], index: 1, kind: input, shape index: {}]   ;;  %s734_s0 = inlined_call_operand.vmem [shape: bf16[176,128], index: 0, kind: input, shape index: {}]   ;;  %s735_s2 = inlined_call_operand.vmem [shape: f32[1,128], index: 2, kind: input, shape index: {}]   ;;  %s736_s3 = inlined_call_operand.vmem [shape: f32[176,128], index: 3, kind: output, shape index: {}]  }
   0x1   :  { %426 = vmatprep.subr.bf16.mxu0 %v523_v0  ;;  %v504_v1 = vld [vmem:[%s733_s1 + $0x38] sm:$0xff]   ;;  %486 = vmatprep.subr.bf16.mxu1 %v523_v0  ;;  %v505_v2 = vld [vmem:[%s733_s1 + $0x30] sm:$0xff]   ;;  %v506_v3 = vld [vmem:[%s733_s1 + $0x28] sm:$0xff]  }
   0x2   :  { %442 = vmatprep.mubr.msk.bf16.mxu0 %vm524_vm0, %v523_v0  ;;  %466 = vmatprep.mubr.msk.bf16.mxu1 %vm524_vm0, %v523_v0  ;;  %v507_v4 = vld [vmem:[%s733_s1 + $0x20] sm:$0xff]   ;;  %v508_v5 = vld [vmem:[%s733_s1 + $0x18] sm:$0xff]   ;;  %v509_v6 = vld [vmem:[%s733_s1 + $0x10] sm:$0xff]  }
   0x3   :  { %427 = vmatpush3.bf16.msra.mxu0 %v504_v1  ;;  %494 = vmatpush3.bf16.msra.mxu1 %v504_v1  ;;  %v510_v7 = vld [vmem:[%s733_s1 + $0x8] sm:$0xff]   ;;  %v511_v8 = vld [vmem:[%s733_s1] sm:$0xff]   ;;  %v513_v10 = vld [vmem:[%s734_s0 + $0x30] sm:$0xff]  }
   0x4   :  { %428 = vmatprep.subr.bf16.mxu0 %v523_v0  ;;  %487 = vmatprep.subr.bf16.mxu1 %v523_v0  ;;  %v512_v9 = vld [vmem:[%s734_s0] sm:$0xff]   ;;  %v514_v11 = vld [vmem:[%s734_s0 + $0x8] sm:$0xff]   ;;  %v515_v12 = vld [vmem:[%s734_s0 + $0x38] sm:$0xff]  }
   0x5   :  { %v516_v13 = vld [vmem:[%s734_s0 + $0x10] sm:$0xff]   ;;  %v517_v14 = vld [vmem:[%s734_s0 + $0x40] sm:$0xff]   ;;  %v518_v15 = vld [vmem:[%s734_s0 + $0x18] sm:$0xff]  }
   0x6   :  { %v519_v16 = vld [vmem:[%s734_s0 + $0x48] sm:$0xff]   ;;  %v520_v17 = vld [vmem:[%s734_s0 + $0x20] sm:$0xff]   ;;  %v521_v18 = vld [vmem:[%s734_s0 + $0x50] sm:$0xff]  }
   0x7   :  { %429 = vmatpush3.bf16.msra.mxu0 %v505_v2  ;;  %495 = vmatpush3.bf16.msra.mxu1 %v505_v2  ;;  %v522_v19 = vld [vmem:[%s734_s0 + $0x28] sm:$0xff]   ;;  %v643_v20 = vld [vmem:[%s735_s2] ss:$0 sm:$0xff] }
   0x8   :  { %430 = vmatprep.subr.bf16.mxu0 %v523_v0  ;;  %488 = vmatprep.subr.bf16.mxu1 %v523_v0 }
   0xb   :  { %431 = vmatpush3.bf16.msra.mxu0 %v506_v3  ;;  %496 = vmatpush3.bf16.msra.mxu1 %v506_v3 }
   0xc   :  { %432 = vmatprep.subr.bf16.mxu0 %v523_v0  ;;  %489 = vmatprep.subr.bf16.mxu1 %v523_v0 }
   0xf   :  { %433 = vmatpush3.bf16.msra.mxu0 %v507_v4  ;;  %497 = vmatpush3.bf16.msra.mxu1 %v507_v4 }
  0x10   :  { %434 = vmatprep.subr.bf16.mxu0 %v523_v0  ;;  %490 = vmatprep.subr.bf16.mxu1 %v523_v0 }
  0x13   :  { %435 = vmatpush3.bf16.msra.mxu0 %v508_v5  ;;  %498 = vmatpush3.bf16.msra.mxu1 %v508_v5 }
  0x14   :  { %436 = vmatprep.subr.bf16.mxu0 %v523_v0  ;;  %491 = vmatprep.subr.bf16.mxu1 %v523_v0 }
  0x17   :  { %437 = vmatpush3.bf16.msra.mxu0 %v509_v6  ;;  %499 = vmatpush3.bf16.msra.mxu1 %v509_v6 }
  0x18   :  { %438 = vmatprep.subr.bf16.mxu0 %v523_v0  ;;  %492 = vmatprep.subr.bf16.mxu1 %v523_v0 }
  0x1b   :  { %439 = vmatpush3.bf16.msra.mxu0 %v510_v7  ;;  %500 = vmatpush3.bf16.msra.mxu1 %v510_v7 }
  0x1c   :  { %440 = vmatprep.subr.bf16.mxu0 %v523_v0  ;;  %493 = vmatprep.subr.bf16.mxu1 %v523_v0 }
  0x1f   :  { %441 = vmatpush3.bf16.msra.mxu0 %v511_v8  ;;  %501 = vmatpush3.bf16.msra.mxu1 %v511_v8 }
  0x22   :  { %443 = vmatmul.mubr.bf16.vlgmr.msra.gmra.mxu0 %v512_v9  ;;  %467 = vmatmul.mubr.bf16.vlgmr.msra.gmra.mxu1 %v513_v10 }
  0x23   :  { %446 = vmatprep.mubr.msk.bf16.mxu0 %vm524_vm0, %v523_v0  ;;  %470 = vmatprep.mubr.msk.bf16.mxu1 %vm524_vm0, %v523_v0 }
  0x2a   :  { %447 = vmatmul.mubr.bf16.gmra.mxu0 %v514_v11  ;;  %471 = vmatmul.mubr.bf16.gmra.mxu1 %v515_v12 }
  0x2b   :  { %450 = vmatprep.mubr.msk.bf16.mxu0 %vm524_vm0, %v523_v0  ;;  %474 = vmatprep.mubr.msk.bf16.mxu1 %vm524_vm0, %v523_v0 }
  0x32   :  { %451 = vmatmul.mubr.bf16.gmra.mxu0 %v516_v13  ;;  %475 = vmatmul.mubr.bf16.gmra.mxu1 %v517_v14 }
  0x33   :  { %454 = vmatprep.mubr.msk.bf16.mxu0 %vm524_vm0, %v523_v0  ;;  %478 = vmatprep.mubr.msk.bf16.mxu1 %vm524_vm0, %v523_v0 }
  0x3a   :  { %455 = vmatmul.mubr.bf16.gmra.mxu0 %v518_v15  ;;  %479 = vmatmul.mubr.bf16.gmra.mxu1 %v519_v16 }
  0x3b   :  { %458 = vmatprep.mubr.msk.bf16.mxu0 %vm524_vm0, %v523_v0  ;;  %482 = vmatprep.mubr.msk.bf16.mxu1 %vm524_vm0, %v523_v0 }
  0x42   :  { %459 = vmatmul.mubr.bf16.gmra.mxu0 %v520_v17  ;;  %483 = vmatmul.mubr.bf16.gmra.mxu1 %v521_v18 }
  0x43   :  { %462 = vmatprep.mubr.msk.bf16.mxu0 %vm524_vm0, %v523_v0 }
  0x4a   :  { %463 = vmatmul.mubr.bf16.gmra.mxu0 %v522_v19 }
  0xe2   :  { %v208_v21 = vpop.f32.mrf.mxu0  ;;  %v256_v22 = vpop.f32.mrf.mxu1 }
  0xe3   :  { %v209_v23 = vadd.f32 %v643_v20, %v208_v21  ;;  %v257_v24 = vadd.f32 %v643_v20, %v256_v22 }
  0xe4   :  { %v444_v25 = vpop.f32.mrf.mxu0  ;;  %v468_v26 = vpop.f32.mrf.mxu1 }
  0xe5   :  { %vm295_vm1 = vcmp.ge.f32.partialorder %v209_v23, 0.0  ;;  %v317_v27 = vmul.f32 0.25, %v209_v23  ;;  %vm307_vm2 = vcmp.ge.f32.partialorder %v257_v24, 0.0  ;;  %v329_v28 = vmul.f32 0.25, %v257_v24 }
  0xe6   :  { %v211_v29 = vpop.f32.mrf.mxu0  ;;  %v259_v30 = vpop.f32.mrf.mxu1 }
  0xe7   :  { %v339_v31 = vsel %vm295_vm1, %v209_v23, %v317_v27  ;;  %v351_v32 = vsel %vm307_vm2, %v257_v24, %v329_v28  ;;  %v212_v33 = vadd.f32 %v643_v20, %v211_v29  ;;  %v260_v34 = vadd.f32 %v643_v20, %v259_v30 }
  0xe8   :  { %361 = vst [vmem:[%s736_s3] sm:$0xff] %v339_v31  ;;  %373 = vst [vmem:[%s736_s3 + $0x60] sm:$0xff] %v351_v32  ;;  %v445_v35 = vpop.f32.mrf.mxu0  ;;  %v469_v36 = vpop.f32.mrf.mxu1 }
  0xe9   :  { %vm296_vm3 = vcmp.ge.f32.partialorder %v212_v33, 0.0  ;;  %v318_v37 = vmul.f32 0.25, %v212_v33  ;;  %vm308_vm4 = vcmp.ge.f32.partialorder %v260_v34, 0.0  ;;  %v330_v38 = vmul.f32 0.25, %v260_v34 }
  0xea   :  { %v216_v39 = vpop.f32.mrf.mxu0  ;;  %v264_v40 = vpop.f32.mrf.mxu1 }
  0xeb   :  { %v340_v41 = vsel %vm296_vm3, %v212_v33, %v318_v37  ;;  %v352_v42 = vsel %vm308_vm4, %v260_v34, %v330_v38  ;;  %v217_v43 = vadd.f32 %v643_v20, %v216_v39  ;;  %v265_v44 = vadd.f32 %v643_v20, %v264_v40 }
  0xec   :  { %362 = vst [vmem:[%s736_s3 + $0x8] sm:$0xff] %v340_v41  ;;  %374 = vst [vmem:[%s736_s3 + $0x68] sm:$0xff] %v352_v42  ;;  %v448_v45 = vpop.f32.mrf.mxu0  ;;  %v472_v46 = vpop.f32.mrf.mxu1 }
  0xed   :  { %vm297_vm5 = vcmp.ge.f32.partialorder %v217_v43, 0.0  ;;  %v319_v47 = vmul.f32 0.25, %v217_v43  ;;  %vm309_vm6 = vcmp.ge.f32.partialorder %v265_v44, 0.0  ;;  %v331_v48 = vmul.f32 0.25, %v265_v44 }
  0xee   :  { %v219_v49 = vpop.f32.mrf.mxu0  ;;  %v267_v50 = vpop.f32.mrf.mxu1 }
  0xef   :  { %v341_v51 = vsel %vm297_vm5, %v217_v43, %v319_v47  ;;  %v353_v52 = vsel %vm309_vm6, %v265_v44, %v331_v48  ;;  %v220_v53 = vadd.f32 %v643_v20, %v219_v49  ;;  %v268_v54 = vadd.f32 %v643_v20, %v267_v50 }
  0xf0   :  { %363 = vst [vmem:[%s736_s3 + $0x10] sm:$0xff] %v341_v51  ;;  %375 = vst [vmem:[%s736_s3 + $0x70] sm:$0xff] %v353_v52  ;;  %v449_v55 = vpop.f32.mrf.mxu0  ;;  %v473_v56 = vpop.f32.mrf.mxu1 }
  0xf1   :  { %vm298_vm7 = vcmp.ge.f32.partialorder %v220_v53, 0.0  ;;  %v320_v57 = vmul.f32 0.25, %v220_v53  ;;  %vm310_vm8 = vcmp.ge.f32.partialorder %v268_v54, 0.0  ;;  %v332_v58 = vmul.f32 0.25, %v268_v54 }
  0xf2   :  { %v224_v59 = vpop.f32.mrf.mxu0  ;;  %v272_v60 = vpop.f32.mrf.mxu1 }
  0xf3   :  { %v342_v61 = vsel %vm298_vm7, %v220_v53, %v320_v57  ;;  %v354_v62 = vsel %vm310_vm8, %v268_v54, %v332_v58  ;;  %v225_v63 = vadd.f32 %v643_v20, %v224_v59  ;;  %v273_v0 = vadd.f32 %v643_v20, %v272_v60 }
  0xf4   :  { %364 = vst [vmem:[%s736_s3 + $0x18] sm:$0xff] %v342_v61  ;;  %376 = vst [vmem:[%s736_s3 + $0x78] sm:$0xff] %v354_v62  ;;  %v452_v1 = vpop.f32.mrf.mxu0  ;;  %v476_v2 = vpop.f32.mrf.mxu1 }
  0xf5   :  { %vm299_vm9 = vcmp.ge.f32.partialorder %v225_v63, 0.0  ;;  %v321_v3 = vmul.f32 0.25, %v225_v63  ;;  %vm311_vm10 = vcmp.ge.f32.partialorder %v273_v0, 0.0  ;;  %v333_v4 = vmul.f32 0.25, %v273_v0 }
  0xf6   :  { %v227_v5 = vpop.f32.mrf.mxu0  ;;  %v275_v6 = vpop.f32.mrf.mxu1 }
  0xf7   :  { %v343_v7 = vsel %vm299_vm9, %v225_v63, %v321_v3  ;;  %v355_v8 = vsel %vm311_vm10, %v273_v0, %v333_v4  ;;  %v228_v9 = vadd.f32 %v643_v20, %v227_v5  ;;  %v276_v10 = vadd.f32 %v643_v20, %v275_v6 }
  0xf8   :  { %365 = vst [vmem:[%s736_s3 + $0x20] sm:$0xff] %v343_v7  ;;  %377 = vst [vmem:[%s736_s3 + $0x80] sm:$0xff] %v355_v8  ;;  %v453_v11 = vpop.f32.mrf.mxu0  ;;  %v477_v12 = vpop.f32.mrf.mxu1 }
  0xf9   :  { %vm300_vm11 = vcmp.ge.f32.partialorder %v228_v9, 0.0  ;;  %v322_v13 = vmul.f32 0.25, %v228_v9  ;;  %vm312_vm12 = vcmp.ge.f32.partialorder %v276_v10, 0.0  ;;  %v334_v14 = vmul.f32 0.25, %v276_v10 }
  0xfa   :  { %v232_v15 = vpop.f32.mrf.mxu0  ;;  %v280_v16 = vpop.f32.mrf.mxu1 }
  0xfb   :  { %v344_v17 = vsel %vm300_vm11, %v228_v9, %v322_v13  ;;  %v356_v18 = vsel %vm312_vm12, %v276_v10, %v334_v14  ;;  %v233_v19 = vadd.f32 %v643_v20, %v232_v15  ;;  %v281_v21 = vadd.f32 %v643_v20, %v280_v16 }
  0xfc   :  { %366 = vst [vmem:[%s736_s3 + $0x28] sm:$0xff] %v344_v17  ;;  %378 = vst [vmem:[%s736_s3 + $0x88] sm:$0xff] %v356_v18  ;;  %v456_v22 = vpop.f32.mrf.mxu0  ;;  %v480_v23 = vpop.f32.mrf.mxu1 }
  0xfd   :  { %vm301_vm13 = vcmp.ge.f32.partialorder %v233_v19, 0.0  ;;  %v323_v24 = vmul.f32 0.25, %v233_v19  ;;  %vm313_vm14 = vcmp.ge.f32.partialorder %v281_v21, 0.0  ;;  %v335_v25 = vmul.f32 0.25, %v281_v21 }
  0xfe   :  { %v235_v26 = vpop.f32.mrf.mxu0  ;;  %v283_v27 = vpop.f32.mrf.mxu1 }
  0xff   :  { %v345_v28 = vsel %vm301_vm13, %v233_v19, %v323_v24  ;;  %v357_v29 = vsel %vm313_vm14, %v281_v21, %v335_v25  ;;  %v236_v30 = vadd.f32 %v643_v20, %v235_v26  ;;  %v284_v31 = vadd.f32 %v643_v20, %v283_v27 }
 0x100   :  { %367 = vst [vmem:[%s736_s3 + $0x30] sm:$0xff] %v345_v28  ;;  %379 = vst [vmem:[%s736_s3 + $0x90] sm:$0xff] %v357_v29  ;;  %v457_v32 = vpop.f32.mrf.mxu0  ;;  %v481_v33 = vpop.f32.mrf.mxu1 }
 0x101   :  { %vm302_vm15 = vcmp.ge.f32.partialorder %v236_v30, 0.0  ;;  %v324_v34 = vmul.f32 0.25, %v236_v30  ;;  %vm314_vm0 = vcmp.ge.f32.partialorder %v284_v31, 0.0  ;;  %v336_v35 = vmul.f32 0.25, %v284_v31 }
 0x102   :  { %v240_v36 = vpop.f32.mrf.mxu0  ;;  %v288_v37 = vpop.f32.mrf.mxu1 }
 0x103   :  { %v346_v38 = vsel %vm302_vm15, %v236_v30, %v324_v34  ;;  %v358_v39 = vsel %vm314_vm0, %v284_v31, %v336_v35  ;;  %v241_v40 = vadd.f32 %v643_v20, %v240_v36  ;;  %v289_v41 = vadd.f32 %v643_v20, %v288_v37 }
 0x104   :  { %368 = vst [vmem:[%s736_s3 + $0x38] sm:$0xff] %v346_v38  ;;  %380 = vst [vmem:[%s736_s3 + $0x98] sm:$0xff] %v358_v39  ;;  %v460_v42 = vpop.f32.mrf.mxu0  ;;  %v484_v43 = vpop.f32.mrf.mxu1 }
 0x105   :  { %vm303_vm1 = vcmp.ge.f32.partialorder %v241_v40, 0.0  ;;  %v325_v44 = vmul.f32 0.25, %v241_v40  ;;  %vm315_vm2 = vcmp.ge.f32.partialorder %v289_v41, 0.0  ;;  %v337_v45 = vmul.f32 0.25, %v289_v41 }
 0x106   :  { %v243_v46 = vpop.f32.mrf.mxu0  ;;  %v291_v47 = vpop.f32.mrf.mxu1 }
 0x107   :  { %v347_v48 = vsel %vm303_vm1, %v241_v40, %v325_v44  ;;  %v359_v49 = vsel %vm315_vm2, %v289_v41, %v337_v45  ;;  %v244_v50 = vadd.f32 %v643_v20, %v243_v46  ;;  %v292_v51 = vadd.f32 %v643_v20, %v291_v47 }
 0x108   :  { %369 = vst [vmem:[%s736_s3 + $0x40] sm:$0xff] %v347_v48  ;;  %381 = vst [vmem:[%s736_s3 + $0xa0] sm:$0xff] %v359_v49  ;;  %v461_v52 = vpop.f32.mrf.mxu0  ;;  %v485_v53 = vpop.f32.mrf.mxu1 }
 0x109   :  { %vm304_vm3 = vcmp.ge.f32.partialorder %v244_v50, 0.0  ;;  %v326_v54 = vmul.f32 0.25, %v244_v50  ;;  %vm316_vm4 = vcmp.ge.f32.partialorder %v292_v51, 0.0  ;;  %v338_v55 = vmul.f32 0.25, %v292_v51 }
 0x10a   :  { %v248_v56 = vpop.f32.mrf.mxu0 }
 0x10b   :  { %v348_v57 = vsel %vm304_vm3, %v244_v50, %v326_v54  ;;  %v360_v58 = vsel %vm316_vm4, %v292_v51, %v338_v55  ;;  %v249_v59 = vadd.f32 %v643_v20, %v248_v56 }
 0x10c   :  { %370 = vst [vmem:[%s736_s3 + $0x48] sm:$0xff] %v348_v57  ;;  %382 = vst [vmem:[%s736_s3 + $0xa8] sm:$0xff] %v360_v58  ;;  %v464_v60 = vpop.f32.mrf.mxu0 }
 0x10d   :  { %vm305_vm5 = vcmp.ge.f32.partialorder %v249_v59, 0.0  ;;  %v327_v61 = vmul.f32 0.25, %v249_v59 }
 0x10e   :  { %v251_v62 = vpop.f32.mrf.mxu0 }
 0x10f   :  { %v349_v63 = vsel %vm305_vm5, %v249_v59, %v327_v61  ;;  %v252_v0 = vadd.f32 %v643_v20, %v251_v62 }
 0x110   :  { %371 = vst [vmem:[%s736_s3 + $0x50] sm:$0xff] %v349_v63  ;;  %v465_v1 = vpop.f32.mrf.mxu0 }
 0x111   :  { %vm306_vm6 = vcmp.ge.f32.partialorder %v252_v0, 0.0  ;;  %v328_v2 = vmul.f32 0.25, %v252_v0 }
 0x113   :  { %v350_v3 = vsel %vm306_vm6, %v252_v0, %v328_v2 }
 0x114   :  { %372 = vst [vmem:[%s736_s3 + $0x58] sm:$0xff] %v350_v3 }

// kernel: downscale_block_fwd.11
= control target key start
LH: loop header
LB: loop body
LE: loop exit
PB: predicated region body
PF: predicated region fallthrough
CT: control target
= control target key end

     0   :  { %s1286_s1 = inlined_call_operand.vmem [shape: bf16[512,128], index: 1, kind: input, shape index: {}]   ;;  %s1287_s0 = inlined_call_operand.vmem [shape: bf16[128,512], index: 0, kind: input, shape index: {}]   ;;  %s1288_s2 = inlined_call_operand.vmem [shape: f32[1,128], index: 2, kind: input, shape index: {}]   ;;  %s1289_s3 = inlined_call_operand.vmem [shape: f32[128,128], index: 3, kind: output, shape index: {}]  }
   0x1   :  { %v925_v0 = vld [vmem:[%s1286_s1 + $0x78] sm:$0xff]   ;;  %v929_v4 = vld [vmem:[%s1286_s1 + $0x70] sm:$0xff]   ;;  %v933_v8 = vld [vmem:[%s1286_s1 + $0x68] sm:$0xff]  }
   0x2   :  { %v926_v1 = vld [vmem:[%s1286_s1 + $0xf8] sm:$0xff]   ;;  %797 = vmatprep.subr.bf16.mxu0 %v925_v0  ;;  %v930_v5 = vld [vmem:[%s1286_s1 + $0xf0] sm:$0xff]   ;;  %v934_v9 = vld [vmem:[%s1286_s1 + $0xe8] sm:$0xff]  }
   0x3   :  { %v927_v2 = vld [vmem:[%s1286_s1 + $0x38] sm:$0xff]   ;;  %861 = vmatprep.subr.bf16.mxu1 %v926_v1  ;;  %v931_v6 = vld [vmem:[%s1286_s1 + $0x30] sm:$0xff]   ;;  %v935_v10 = vld [vmem:[%s1286_s1 + $0x28] sm:$0xff]  }
   0x4   :  { %v928_v3 = vld [vmem:[%s1286_s1 + $0xb8] sm:$0xff]   ;;  %798 = vmatpush3.bf16.msra.mxu0 %v927_v2  ;;  %v932_v7 = vld [vmem:[%s1286_s1 + $0xb0] sm:$0xff]   ;;  %v936_v11 = vld [vmem:[%s1286_s1 + $0xa8] sm:$0xff]  }
   0x5   :  { %862 = vmatpush3.bf16.msra.mxu1 %v928_v3  ;;  %799 = vmatprep.subr.bf16.mxu0 %v929_v4  ;;  %v937_v12 = vld [vmem:[%s1286_s1 + $0x60] sm:$0xff]   ;;  %v941_v16 = vld [vmem:[%s1286_s1 + $0x58] sm:$0xff]   ;;  %v945_v20 = vld [vmem:[%s1286_s1 + $0x50] sm:$0xff]  }
   0x6   :  { %863 = vmatprep.subr.bf16.mxu1 %v930_v5  ;;  %v938_v13 = vld [vmem:[%s1286_s1 + $0xe0] sm:$0xff]   ;;  %v942_v17 = vld [vmem:[%s1286_s1 + $0xd8] sm:$0xff]   ;;  %v946_v21 = vld [vmem:[%s1286_s1 + $0xd0] sm:$0xff]  }
   0x7   :  { %v939_v14 = vld [vmem:[%s1286_s1 + $0x20] sm:$0xff]   ;;  %v943_v18 = vld [vmem:[%s1286_s1 + $0x18] sm:$0xff]   ;;  %v947_v22 = vld [vmem:[%s1286_s1 + $0x10] sm:$0xff]  }
   0x8   :  { %800 = vmatpush3.bf16.msra.mxu0 %v931_v6  ;;  %v940_v15 = vld [vmem:[%s1286_s1 + $0xa0] sm:$0xff]   ;;  %v944_v19 = vld [vmem:[%s1286_s1 + $0x98] sm:$0xff]   ;;  %v948_v23 = vld [vmem:[%s1286_s1 + $0x90] sm:$0xff]  }
   0x9   :  { %864 = vmatpush3.bf16.msra.mxu1 %v932_v7  ;;  %801 = vmatprep.subr.bf16.mxu0 %v933_v8  ;;  %v949_v24 = vld [vmem:[%s1286_s1 + $0x48] sm:$0xff]   ;;  %v953_v28 = vld [vmem:[%s1286_s1 + $0x40] sm:$0xff]  }
   0xa   :  { %865 = vmatprep.subr.bf16.mxu1 %v934_v9  ;;  %v950_v25 = vld [vmem:[%s1286_s1 + $0xc8] sm:$0xff]   ;;  %v954_v29 = vld [vmem:[%s1286_s1 + $0xc0] sm:$0xff]  }
   0xb   :  { %v951_v26 = vld [vmem:[%s1286_s1 + $0x8] sm:$0xff]   ;;  %v955_v30 = vld [vmem:[%s1286_s1] sm:$0xff]  }
   0xc   :  { %802 = vmatpush3.bf16.msra.mxu0 %v935_v10  ;;  %v952_v27 = vld [vmem:[%s1286_s1 + $0x88] sm:$0xff]   ;;  %v956_v31 = vld [vmem:[%s1286_s1 + $0x80] sm:$0xff]  }
   0xd   :  { %866 = vmatpush3.bf16.msra.mxu1 %v936_v11  ;;  %803 = vmatprep.subr.bf16.mxu0 %v937_v12  ;;  %v957_v32 = vld [vmem:[%s1287_s0] ss:$16 sps:$4 sm:$0xff]   ;;  %v959_v33 = vld [vmem:[%s1287_s0 + $0x4] ss:$16 sps:$4 sm:$0xff]   ;;  %v960_v34 = vld [vmem:[%s1287_s0 + $0x8] ss:$16 sps:$4 sm:$0xff]  }
   0xe   :  { %867 = vmatprep.subr.bf16.mxu1 %v938_v13  ;;  %v962_v35 = vld [vmem:[%s1287_s0 + $0xc] ss:$16 sps:$4 sm:$0xff]   ;;  %502 = vmatprep.mubr.bf16.mxu0 %v959_v33  ;;  %v963_v36 = vld [vmem:[%s1287_s0 + $0x24] ss:$16 sps:$4 sm:$0xff]   ;;  %v967_v38 = vld [vmem:[%s1287_s0 + $0x20] ss:$16 sps:$4 sm:$0xff]  }
   0xf   :  { %599 = vmatprep.mubr.bf16.mxu1 %v962_v35  ;;  %v965_v37 = vld [vmem:[%s1287_s0 + $0x2c] ss:$16 sps:$4 sm:$0xff]   ;;  %v968_v39 = vld [vmem:[%s1287_s0 + $0x28] ss:$16 sps:$4 sm:$0xff]   ;;  %v969_v40 = vld [vmem:[%s1287_s0 + $0x44] ss:$16 sps:$4 sm:$0xff]  }
  0x10   :  { %804 = vmatpush3.bf16.msra.mxu0 %v939_v14  ;;  %v971_v41 = vld [vmem:[%s1287_s0 + $0x4c] ss:$16 sps:$4 sm:$0xff]   ;;  %v973_v42 = vld [vmem:[%s1287_s0 + $0x40] ss:$16 sps:$4 sm:$0xff]   ;;  %v974_v43 = vld [vmem:[%s1287_s0 + $0x48] ss:$16 sps:$4 sm:$0xff]  }
  0x11   :  { %868 = vmatpush3.bf16.msra.mxu1 %v940_v15  ;;  %805 = vmatprep.subr.bf16.mxu0 %v941_v16  ;;  %v975_v44 = vld [vmem:[%s1287_s0 + $0x64] ss:$16 sps:$4 sm:$0xff]   ;;  %v977_v45 = vld [vmem:[%s1287_s0 + $0x6c] ss:$16 sps:$4 sm:$0xff]   ;;  %v979_v46 = vld [vmem:[%s1287_s0 + $0x60] ss:$16 sps:$4 sm:$0xff]  }
  0x12   :  { %869 = vmatprep.subr.bf16.mxu1 %v942_v17  ;;  %v980_v47 = vld [vmem:[%s1287_s0 + $0x68] ss:$16 sps:$4 sm:$0xff]   ;;  %v981_v48 = vld [vmem:[%s1287_s0 + $0x84] ss:$16 sps:$4 sm:$0xff]   ;;  %v983_v49 = vld [vmem:[%s1287_s0 + $0x8c] ss:$16 sps:$4 sm:$0xff]  }
  0x13   :  { %v985_v50 = vld [vmem:[%s1287_s0 + $0x80] ss:$16 sps:$4 sm:$0xff]   ;;  %v986_v51 = vld [vmem:[%s1287_s0 + $0x88] ss:$16 sps:$4 sm:$0xff]   ;;  %v987_v52 = vld [vmem:[%s1287_s0 + $0xa4] ss:$16 sps:$4 sm:$0xff]  }
  0x14   :  { %806 = vmatpush3.bf16.msra.mxu0 %v943_v18  ;;  %v989_v53 = vld [vmem:[%s1287_s0 + $0xac] ss:$16 sps:$4 sm:$0xff]   ;;  %v991_v54 = vld [vmem:[%s1287_s0 + $0xa0] ss:$16 sps:$4 sm:$0xff]   ;;  %v992_v55 = vld [vmem:[%s1287_s0 + $0xa8] ss:$16 sps:$4 sm:$0xff]  }
  0x15   :  { %870 = vmatpush3.bf16.msra.mxu1 %v944_v19  ;;  %807 = vmatprep.subr.bf16.mxu0 %v945_v20  ;;  %v993_v56 = vld [vmem:[%s1287_s0 + $0xc4] ss:$16 sps:$4 sm:$0xff]   ;;  %v995_v57 = vld [vmem:[%s1287_s0 + $0xcc] ss:$16 sps:$4 sm:$0xff]   ;;  %v997_v58 = vld [vmem:[%s1287_s0 + $0xc0] ss:$16 sps:$4 sm:$0xff]  }
  0x16   :  { %871 = vmatprep.subr.bf16.mxu1 %v946_v21  ;;  %v998_v59 = vld [vmem:[%s1287_s0 + $0xc8] ss:$16 sps:$4 sm:$0xff]   ;;  %v999_v60 = vld [vmem:[%s1287_s0 + $0xe4] ss:$16 sps:$4 sm:$0xff]   ;;  %v1001_v61 = vld [vmem:[%s1287_s0 + $0xec] ss:$16 sps:$4 sm:$0xff]  }
  0x17   :  { %v1003_v62 = vld [vmem:[%s1287_s0 + $0xe0] ss:$16 sps:$4 sm:$0xff]   ;;  %v1004_v63 = vld [vmem:[%s1287_s0 + $0xe8] ss:$16 sps:$4 sm:$0xff]  }
  0x18   :  { %808 = vmatpush3.bf16.msra.mxu0 %v947_v22  ;;  %v1220_v2 = vld [vmem:[%s1288_s2] ss:$0 sm:$0xff] }
  0x19   :  { %872 = vmatpush3.bf16.msra.mxu1 %v948_v23  ;;  %809 = vmatprep.subr.bf16.mxu0 %v949_v24 }
  0x1a   :  { %873 = vmatprep.subr.bf16.mxu1 %v950_v25 }
  0x1c   :  { %810 = vmatpush3.bf16.msra.mxu0 %v951_v26 }
  0x1d   :  { %874 = vmatpush3.bf16.msra.mxu1 %v952_v27  ;;  %811 = vmatprep.subr.bf16.mxu0 %v953_v28 }
  0x1e   :  { %875 = vmatprep.subr.bf16.mxu1 %v954_v29 }
  0x20   :  { %812 = vmatpush3.bf16.msra.mxu0 %v955_v30 }
  0x21   :  { %876 = vmatpush3.bf16.msra.mxu1 %v956_v31 }
  0x23   :  { %503 = vmatmul.mubr.bf16.vlgmr.msra.gmra.mxu0 %v957_v32 }
  0x24   :  { %600 = vmatmul.mubr.bf16.vlgmr.msra.gmra.mxu1 %v960_v34  ;;  %510 = vmatprep.mubr.bf16.mxu0 %v963_v36 }
  0x25   :  { %607 = vmatprep.mubr.bf16.mxu1 %v965_v37 }
  0x2b   :  { %511 = vmatmul.mubr.bf16.gmra.mxu0 %v967_v38 }
  0x2c   :  { %608 = vmatmul.mubr.bf16.gmra.mxu1 %v968_v39  ;;  %518 = vmatprep.mubr.bf16.mxu0 %v969_v40 }
  0x2d   :  { %615 = vmatprep.mubr.bf16.mxu1 %v971_v41 }
  0x33   :  { %519 = vmatmul.mubr.bf16.gmra.mxu0 %v973_v42 }
  0x34   :  { %616 = vmatmul.mubr.bf16.gmra.mxu1 %v974_v43  ;;  %526 = vmatprep.mubr.bf16.mxu0 %v975_v44 }
  0x35   :  { %623 = vmatprep.mubr.bf16.mxu1 %v977_v45 }
  0x3b   :  { %527 = vmatmul.mubr.bf16.gmra.mxu0 %v979_v46 }
  0x3c   :  { %624 = vmatmul.mubr.bf16.gmra.mxu1 %v980_v47  ;;  %534 = vmatprep.mubr.bf16.mxu0 %v981_v48 }
  0x3d   :  { %631 = vmatprep.mubr.bf16.mxu1 %v983_v49 }
  0x43   :  { %535 = vmatmul.mubr.bf16.gmra.mxu0 %v985_v50 }
  0x44   :  { %632 = vmatmul.mubr.bf16.gmra.mxu1 %v986_v51  ;;  %542 = vmatprep.mubr.bf16.mxu0 %v987_v52 }
  0x45   :  { %639 = vmatprep.mubr.bf16.mxu1 %v989_v53 }
  0x4b   :  { %543 = vmatmul.mubr.bf16.gmra.mxu0 %v991_v54 }
  0x4c   :  { %640 = vmatmul.mubr.bf16.gmra.mxu1 %v992_v55  ;;  %550 = vmatprep.mubr.bf16.mxu0 %v993_v56 }
  0x4d   :  { %647 = vmatprep.mubr.bf16.mxu1 %v995_v57 }
  0x53   :  { %551 = vmatmul.mubr.bf16.gmra.mxu0 %v997_v58 }
  0x54   :  { %648 = vmatmul.mubr.bf16.gmra.mxu1 %v998_v59  ;;  %558 = vmatprep.mubr.bf16.mxu0 %v999_v60 }
  0x55   :  { %655 = vmatprep.mubr.bf16.mxu1 %v1001_v61 }
  0x5b   :  { %559 = vmatmul.mubr.bf16.gmra.mxu0 %v1003_v62 }
  0x5c   :  { %656 = vmatmul.mubr.bf16.gmra.mxu1 %v1004_v63 }
  0xe3   :  { %v813_v0 = vpop.f32.mrf.mxu0 }
  0xe4   :  { %v877_v1 = vpop.f32.mrf.mxu1 }
  0xe5   :  { %v814_v3 = vpop.f32.mrf.mxu0 }
  0xe6   :  { %v815_v4 = vadd.f32 %v814_v3, %v813_v0  ;;  %v878_v5 = vpop.f32.mrf.mxu1 }
  0xe7   :  { %v816_v6 = vpop.f32.mrf.mxu0  ;;  %v879_v8 = vadd.f32 %v878_v5, %v877_v1 }
  0xe8   :  { %v505_v7 = vadd.f32 %v815_v4, %v1220_v2  ;;  %v880_v9 = vpop.f32.mrf.mxu1 }
  0xe9   :  { %v817_v10 = vpop.f32.mrf.mxu0 }
  0xea   :  { %v602_v11 = vadd.f32 %v879_v8, %v505_v7  ;;  %v818_v12 = vadd.f32 %v817_v10, %v816_v6  ;;  %v881_v13 = vpop.f32.mrf.mxu1 }
  0xeb   :  { %v819_v14 = vpop.f32.mrf.mxu0  ;;  %v882_v17 = vadd.f32 %v881_v13, %v880_v9 }
  0xec   :  { %vm664_vm0 = vcmp.ge.f32.partialorder %v602_v11, 0.0  ;;  %v680_v15 = vmul.f32 0.25, %v602_v11  ;;  %v508_v16 = vadd.f32 %v818_v12, %v1220_v2  ;;  %v883_v18 = vpop.f32.mrf.mxu1 }
  0xed   :  { %v820_v19 = vpop.f32.mrf.mxu0 }
  0xee   :  { %v696_v20 = vsel %vm664_vm0, %v602_v11, %v680_v15  ;;  %v605_v21 = vadd.f32 %v882_v17, %v508_v16  ;;  %v821_v22 = vadd.f32 %v820_v19, %v819_v14  ;;  %v884_v23 = vpop.f32.mrf.mxu1 }
  0xef   :  { %712 = vst [vmem:[%s1289_s3] sm:$0xff] %v696_v20  ;;  %v822_v24 = vpop.f32.mrf.mxu0  ;;  %v885_v27 = vadd.f32 %v884_v23, %v883_v18 }
  0xf0   :  { %vm665_vm1 = vcmp.ge.f32.partialorder %v605_v21, 0.0  ;;  %v681_v25 = vmul.f32 0.25, %v605_v21  ;;  %v513_v26 = vadd.f32 %v821_v22, %v1220_v2  ;;  %v886_v28 = vpop.f32.mrf.mxu1 }
  0xf1   :  { %v823_v29 = vpop.f32.mrf.mxu0 }
  0xf2   :  { %v697_v30 = vsel %vm665_vm1, %v605_v21, %v681_v25  ;;  %v610_v31 = vadd.f32 %v885_v27, %v513_v26  ;;  %v824_v32 = vadd.f32 %v823_v29, %v822_v24  ;;  %v887_v33 = vpop.f32.mrf.mxu1 }
  0xf3   :  { %713 = vst [vmem:[%s1289_s3 + $0x8] sm:$0xff] %v697_v30  ;;  %v825_v34 = vpop.f32.mrf.mxu0  ;;  %v888_v37 = vadd.f32 %v887_v33, %v886_v28 }
  0xf4   :  { %vm666_vm2 = vcmp.ge.f32.partialorder %v610_v31, 0.0  ;;  %v682_v35 = vmul.f32 0.25, %v610_v31  ;;  %v516_v36 = vadd.f32 %v824_v32, %v1220_v2  ;;  %v889_v38 = vpop.f32.mrf.mxu1 }
  0xf5   :  { %v826_v39 = vpop.f32.mrf.mxu0 }
  0xf6   :  { %v698_v40 = vsel %vm666_vm2, %v610_v31, %v682_v35  ;;  %v613_v41 = vadd.f32 %v888_v37, %v516_v36  ;;  %v827_v42 = vadd.f32 %v826_v39, %v825_v34  ;;  %v890_v43 = vpop.f32.mrf.mxu1 }
  0xf7   :  { %714 = vst [vmem:[%s1289_s3 + $0x10] sm:$0xff] %v698_v40  ;;  %v828_v44 = vpop.f32.mrf.mxu0  ;;  %v891_v47 = vadd.f32 %v890_v43, %v889_v38 }
  0xf8   :  { %vm667_vm3 = vcmp.ge.f32.partialorder %v613_v41, 0.0  ;;  %v683_v45 = vmul.f32 0.25, %v613_v41  ;;  %v521_v46 = vadd.f32 %v827_v42, %v1220_v2  ;;  %v892_v48 = vpop.f32.mrf.mxu1 }
  0xf9   :  { %v829_v49 = vpop.f32.mrf.mxu0 }
  0xfa   :  { %v699_v50 = vsel %vm667_vm3, %v613_v41, %v683_v45  ;;  %v618_v51 = vadd.f32 %v891_v47, %v521_v46  ;;  %v830_v52 = vadd.f32 %v829_v49, %v828_v44  ;;  %v893_v53 = vpop.f32.mrf.mxu1 }
  0xfb   :  { %715 = vst [vmem:[%s1289_s3 + $0x18] sm:$0xff] %v699_v50  ;;  %v831_v54 = vpop.f32.mrf.mxu0  ;;  %v894_v57 = vadd.f32 %v893_v53, %v892_v48 }
  0xfc   :  { %vm668_vm4 = vcmp.ge.f32.partialorder %v618_v51, 0.0  ;;  %v684_v55 = vmul.f32 0.25, %v618_v51  ;;  %v524_v56 = vadd.f32 %v830_v52, %v1220_v2  ;;  %v895_v58 = vpop.f32.mrf.mxu1 }
  0xfd   :  { %v832_v59 = vpop.f32.mrf.mxu0 }
  0xfe   :  { %v700_v60 = vsel %vm668_vm4, %v618_v51, %v684_v55  ;;  %v621_v61 = vadd.f32 %v894_v57, %v524_v56  ;;  %v833_v62 = vadd.f32 %v832_v59, %v831_v54  ;;  %v896_v63 = vpop.f32.mrf.mxu1 }
  0xff   :  { %716 = vst [vmem:[%s1289_s3 + $0x20] sm:$0xff] %v700_v60  ;;  %v834_v0 = vpop.f32.mrf.mxu0  ;;  %v897_v4 = vadd.f32 %v896_v63, %v895_v58 }
 0x100   :  { %vm669_vm5 = vcmp.ge.f32.partialorder %v621_v61, 0.0  ;;  %v685_v1 = vmul.f32 0.25, %v621_v61  ;;  %v529_v3 = vadd.f32 %v833_v62, %v1220_v2  ;;  %v898_v5 = vpop.f32.mrf.mxu1 }
 0x101   :  { %v835_v6 = vpop.f32.mrf.mxu0 }
 0x102   :  { %v701_v7 = vsel %vm669_vm5, %v621_v61, %v685_v1  ;;  %v626_v8 = vadd.f32 %v897_v4, %v529_v3  ;;  %v836_v9 = vadd.f32 %v835_v6, %v834_v0  ;;  %v899_v10 = vpop.f32.mrf.mxu1 }
 0x103   :  { %717 = vst [vmem:[%s1289_s3 + $0x28] sm:$0xff] %v701_v7  ;;  %v837_v11 = vpop.f32.mrf.mxu0  ;;  %v900_v14 = vadd.f32 %v899_v10, %v898_v5 }
 0x104   :  { %vm670_vm6 = vcmp.ge.f32.partialorder %v626_v8, 0.0  ;;  %v686_v12 = vmul.f32 0.25, %v626_v8  ;;  %v532_v13 = vadd.f32 %v836_v9, %v1220_v2  ;;  %v901_v15 = vpop.f32.mrf.mxu1 }
 0x105   :  { %v838_v16 = vpop.f32.mrf.mxu0 }
 0x106   :  { %v702_v17 = vsel %vm670_vm6, %v626_v8, %v686_v12  ;;  %v629_v18 = vadd.f32 %v900_v14, %v532_v13  ;;  %v839_v19 = vadd.f32 %v838_v16, %v837_v11  ;;  %v902_v20 = vpop.f32.mrf.mxu1 }
 0x107   :  { %718 = vst [vmem:[%s1289_s3 + $0x30] sm:$0xff] %v702_v17  ;;  %v840_v21 = vpop.f32.mrf.mxu0  ;;  %v903_v24 = vadd.f32 %v902_v20, %v901_v15 }
 0x108   :  { %vm671_vm7 = vcmp.ge.f32.partialorder %v629_v18, 0.0  ;;  %v687_v22 = vmul.f32 0.25, %v629_v18  ;;  %v537_v23 = vadd.f32 %v839_v19, %v1220_v2  ;;  %v904_v25 = vpop.f32.mrf.mxu1 }
 0x109   :  { %v841_v26 = vpop.f32.mrf.mxu0 }
 0x10a   :  { %v703_v27 = vsel %vm671_vm7, %v629_v18, %v687_v22  ;;  %v634_v28 = vadd.f32 %v903_v24, %v537_v23  ;;  %v842_v29 = vadd.f32 %v841_v26, %v840_v21  ;;  %v905_v30 = vpop.f32.mrf.mxu1 }
 0x10b   :  { %719 = vst [vmem:[%s1289_s3 + $0x38] sm:$0xff] %v703_v27  ;;  %v843_v31 = vpop.f32.mrf.mxu0  ;;  %v906_v34 = vadd.f32 %v905_v30, %v904_v25 }
 0x10c   :  { %vm672_vm8 = vcmp.ge.f32.partialorder %v634_v28, 0.0  ;;  %v688_v32 = vmul.f32 0.25, %v634_v28  ;;  %v540_v33 = vadd.f32 %v842_v29, %v1220_v2  ;;  %v907_v35 = vpop.f32.mrf.mxu1 }
 0x10d   :  { %v844_v36 = vpop.f32.mrf.mxu0 }
 0x10e   :  { %v704_v37 = vsel %vm672_vm8, %v634_v28, %v688_v32  ;;  %v637_v38 = vadd.f32 %v906_v34, %v540_v33  ;;  %v845_v39 = vadd.f32 %v844_v36, %v843_v31  ;;  %v908_v40 = vpop.f32.mrf.mxu1 }
 0x10f   :  { %720 = vst [vmem:[%s1289_s3 + $0x40] sm:$0xff] %v704_v37  ;;  %v846_v41 = vpop.f32.mrf.mxu0  ;;  %v909_v44 = vadd.f32 %v908_v40, %v907_v35 }
 0x110   :  { %vm673_vm9 = vcmp.ge.f32.partialorder %v637_v38, 0.0  ;;  %v689_v42 = vmul.f32 0.25, %v637_v38  ;;  %v545_v43 = vadd.f32 %v845_v39, %v1220_v2  ;;  %v910_v45 = vpop.f32.mrf.mxu1 }
 0x111   :  { %v847_v46 = vpop.f32.mrf.mxu0 }
 0x112   :  { %v705_v47 = vsel %vm673_vm9, %v637_v38, %v689_v42  ;;  %v642_v48 = vadd.f32 %v909_v44, %v545_v43  ;;  %v848_v49 = vadd.f32 %v847_v46, %v846_v41  ;;  %v911_v50 = vpop.f32.mrf.mxu1 }
 0x113   :  { %721 = vst [vmem:[%s1289_s3 + $0x48] sm:$0xff] %v705_v47  ;;  %v849_v51 = vpop.f32.mrf.mxu0  ;;  %v912_v54 = vadd.f32 %v911_v50, %v910_v45 }
 0x114   :  { %vm674_vm10 = vcmp.ge.f32.partialorder %v642_v48, 0.0  ;;  %v690_v52 = vmul.f32 0.25, %v642_v48  ;;  %v548_v53 = vadd.f32 %v848_v49, %v1220_v2  ;;  %v913_v55 = vpop.f32.mrf.mxu1 }
 0x115   :  { %v850_v56 = vpop.f32.mrf.mxu0 }
 0x116   :  { %v706_v57 = vsel %vm674_vm10, %v642_v48, %v690_v52  ;;  %v645_v58 = vadd.f32 %v912_v54, %v548_v53  ;;  %v851_v59 = vadd.f32 %v850_v56, %v849_v51  ;;  %v914_v60 = vpop.f32.mrf.mxu1 }
 0x117   :  { %722 = vst [vmem:[%s1289_s3 + $0x50] sm:$0xff] %v706_v57  ;;  %v852_v61 = vpop.f32.mrf.mxu0  ;;  %v915_v0 = vadd.f32 %v914_v60, %v913_v55 }
 0x118   :  { %vm675_vm11 = vcmp.ge.f32.partialorder %v645_v58, 0.0  ;;  %v691_v62 = vmul.f32 0.25, %v645_v58  ;;  %v553_v63 = vadd.f32 %v851_v59, %v1220_v2  ;;  %v916_v1 = vpop.f32.mrf.mxu1 }
 0x119   :  { %v853_v3 = vpop.f32.mrf.mxu0 }
 0x11a   :  { %v707_v4 = vsel %vm675_vm11, %v645_v58, %v691_v62  ;;  %v650_v5 = vadd.f32 %v915_v0, %v553_v63  ;;  %v854_v6 = vadd.f32 %v853_v3, %v852_v61  ;;  %v917_v7 = vpop.f32.mrf.mxu1 }
 0x11b   :  { %723 = vst [vmem:[%s1289_s3 + $0x58] sm:$0xff] %v707_v4  ;;  %v855_v8 = vpop.f32.mrf.mxu0  ;;  %v918_v11 = vadd.f32 %v917_v7, %v916_v1 }
 0x11c   :  { %vm676_vm12 = vcmp.ge.f32.partialorder %v650_v5, 0.0  ;;  %v692_v9 = vmul.f32 0.25, %v650_v5  ;;  %v556_v10 = vadd.f32 %v854_v6, %v1220_v2  ;;  %v919_v12 = vpop.f32.mrf.mxu1 }
 0x11d   :  { %v856_v13 = vpop.f32.mrf.mxu0 }
 0x11e   :  { %v708_v14 = vsel %vm676_vm12, %v650_v5, %v692_v9  ;;  %v653_v15 = vadd.f32 %v918_v11, %v556_v10  ;;  %v857_v16 = vadd.f32 %v856_v13, %v855_v8  ;;  %v920_v17 = vpop.f32.mrf.mxu1 }
 0x11f   :  { %724 = vst [vmem:[%s1289_s3 + $0x60] sm:$0xff] %v708_v14  ;;  %v858_v18 = vpop.f32.mrf.mxu0  ;;  %v921_v21 = vadd.f32 %v920_v17, %v919_v12 }
 0x120   :  { %vm677_vm13 = vcmp.ge.f32.partialorder %v653_v15, 0.0  ;;  %v693_v19 = vmul.f32 0.25, %v653_v15  ;;  %v561_v20 = vadd.f32 %v857_v16, %v1220_v2  ;;  %v922_v22 = vpop.f32.mrf.mxu1 }
 0x121   :  { %v859_v23 = vpop.f32.mrf.mxu0 }
 0x122   :  { %v709_v24 = vsel %vm677_vm13, %v653_v15, %v693_v19  ;;  %v658_v25 = vadd.f32 %v921_v21, %v561_v20  ;;  %v860_v26 = vadd.f32 %v859_v23, %v858_v18  ;;  %v923_v27 = vpop.f32.mrf.mxu1 }
 0x123   :  { %725 = vst [vmem:[%s1289_s3 + $0x68] sm:$0xff] %v709_v24  ;;  %v924_v30 = vadd.f32 %v923_v27, %v922_v22 }
 0x124   :  { %vm678_vm14 = vcmp.ge.f32.partialorder %v658_v25, 0.0  ;;  %v694_v28 = vmul.f32 0.25, %v658_v25  ;;  %v564_v29 = vadd.f32 %v860_v26, %v1220_v2 }
 0x126   :  { %v710_v31 = vsel %vm678_vm14, %v658_v25, %v694_v28  ;;  %v661_v32 = vadd.f32 %v924_v30, %v564_v29 }
 0x127   :  { %726 = vst [vmem:[%s1289_s3 + $0x70] sm:$0xff] %v710_v31 }
 0x128   :  { %vm679_vm15 = vcmp.ge.f32.partialorder %v661_v32, 0.0  ;;  %v695_v33 = vmul.f32 0.25, %v661_v32 }
 0x12a   :  { %v711_v34 = vsel %vm679_vm15, %v661_v32, %v695_v33 }
 0x12b   :  { %727 = vst [vmem:[%s1289_s3 + $0x78] sm:$0xff] %v711_v34 }

</bundles_post_ra>
